<compile_context>
chip_gen: v5e
topology: v5e:2x2
jax: 0.10.0
libtpu: 0.0.40
codegen_flags: <defaults>
</compile_context>

<pallas_src>
import functools
import math

import jax
import jax.numpy as jnp
from jax.experimental import pallas as pl
from jax.experimental.pallas import tpu as pltpu


def _sigmoid(x):
    # EUP-friendly: one tanh push per gate instead of exp + VPU divide.
    return 0.5 * jnp.tanh(0.5 * x) + 0.5


def _gate_update(gates, c_prev, H):
    """PyTorch gate order (i, f, g, o). gates:(B,4H) f32, c_prev:(B,H) f32."""
    i = _sigmoid(gates[:, 0 * H:1 * H])
    f = _sigmoid(gates[:, 1 * H:2 * H])
    g = jnp.tanh(gates[:, 2 * H:3 * H])
    o = _sigmoid(gates[:, 3 * H:4 * H])
    c_new = f * c_prev + i * g
    h_new = o * jnp.tanh(c_new)
    return h_new, c_new


def _pick_unroll(tc, B):
    """Steps statically unrolled per group.

    Requires (unroll*B) % 16 == 0 so every dynamic group load starts on a packed
    bf16 sublane-tile boundary, and tc % unroll == 0.  Falls back to a single
    group per chunk (start 0 is always aligned) when no such unroll exists.
    """
    for u in range(min(8, tc), 0, -1):
        if tc % u == 0 and (u * B) % 16 == 0:
            return u
    return tc


def lstm_recurrence_kernel(gx0_ref, wf_ref, b1_ref, h1_out_ref, state_ref, *, unroll):
    """One grid step = one chunk of tc timesteps of the 2-layer LSTM recurrence.

    gx0_ref  : (tc*B, 4H) bf16  precomputed x_t @ W_ih0 + b0, time-major packed
    wf_ref   : (2H, 8H)   bf16  fused [[W_ih1, W_hh0], [W_hh1, 0]]
    b1_ref   : (1, 4H)    f32   layer-1 bias (b_ih1 + b_hh1)
    h1_out   : (B, H)     f32   final hidden state of the top layer
    state    : (B, 7H)    f32   VMEM scratch [r0(4H) | c0 | h1 | c1], r0 = h0 @ W_hh0
    """
    B, H = h1_out_ref.shape
    tc = gx0_ref.shape[0] // B
    rows = unroll * B                     # rows per aligned group load
    n_groups = tc // unroll

    @pl.when(pl.program_id(0) == 0)
    def _():
        # h0 = 0  =>  r0 = h0 @ W_hh0 = 0, so zero-init is exact.
        state_ref[...] = jnp.zeros_like(state_ref)

    # Hoist weight read and the bias broadcast out of the time loop (no CSE of
    # broadcast_in_dim inside the unrolled body otherwise).
    wf = wf_ref[...]                                        # (2H, 8H) bf16
    b1 = jnp.broadcast_to(b1_ref[...], (B, 4 * H))          # (B, 4H)  f32

    st = state_ref[...]
    carry0 = (st[:, 0:4 * H],            # r0 = h0_{t-1} @ W_hh0
              st[:, 4 * H:5 * H],        # c0
              st[:, 5 * H:6 * H],        # h1
              st[:, 6 * H:7 * H])        # c1

    def cell(gx, carry):
        r0, c0, h1, c1 = carry
        # Layer 0: input projection precomputed, recurrent part carried as r0.
        h0, c0 = _gate_update(gx + r0, c0, H)
        # TODO(synk): nn.LSTM inter-layer dropout (p=0.75) is train-only; this
        # kernel implements eval/inference semantics (identity).
        # Single fused MXU push: [g1_t | h0_t @ W_hh0] = [h0_t, h1_{t-1}] @ W_fused.
        xh = jnp.concatenate([h0, h1], axis=-1).astype(jnp.bfloat16)      # (B, 2H)
        fused = jnp.dot(xh, wf, preferred_element_type=jnp.float32)       # (B, 8H)
        h1, c1 = _gate_update(fused[:, :4 * H] + b1, c1, H)
        return (fused[:, 4 * H:], c0, h1, c1)

    def group(j, carry):
        # Sublane-tile-aligned dynamic load of `unroll` packed timesteps.
        base = pl.multiple_of(j * rows, rows)
        gx_grp = gx0_ref[pl.ds(base, rows), :].astype(jnp.float32)        # (rows, 4H)
        for s in range(unroll):                                           # static unroll
            carry = cell(gx_grp[s * B:(s + 1) * B, :], carry)
        return carry

    r0, c0, h1, c1 = jax.lax.fori_loop(0, n_groups, group, carry0)

    state_ref[...] = jnp.concatenate([r0, c0, h1, c1], axis=-1)

    @pl.when(pl.program_id(0) == pl.num_programs(0) - 1)
    def _():
        h1_out_ref[...] = h1.astype(h1_out_ref.dtype)


@functools.partial(jax.jit, static_argnames=("time_chunk",))
def sequence_model_forward(x, params, *, time_chunk=32):
    B, T, F = x.shape
    H = params["whh0"].shape[0]

    # Largest chunk <= time_chunk that divides T (shapes are static under jit).
    tc = math.gcd(T, max(1, min(time_chunk, T)))
    unroll = _pick_unroll(tc, B)

    # ---- Phase 1 (XLA, off the serial path): hoisted layer-0 input projection. --
    x_tm = jnp.transpose(x, (1, 0, 2))                                    # (T, B, F)
    gx0 = (jnp.einsum("tbf,fg->tbg", x_tm, params["wih0"],
                      preferred_element_type=jnp.float32)
           + params["b0"])                                                # (T, B, 4H) f32
    # bf16 storage (halves HBM DMA + chunk VMEM); sublane-dense packing for B < 8.
    gx0 = gx0.astype(jnp.bfloat16).reshape(T // tc, tc * B, 4 * H)

    # Fused skewed weight: [[W_ih1, W_hh0], [W_hh1, 0]]  (2H, 8H), bf16 on the MXU.
    w_fused = jnp.concatenate(
        [jnp.concatenate([params["wih1"], params["whh0"]], axis=1),
         jnp.concatenate([params["whh1"], jnp.zeros_like(params["whh1"])], axis=1)],
        axis=0).astype(jnp.bfloat16)                                      # (2H, 8H)
    b1 = params["b1"].astype(jnp.float32)                                 # (1, 4H)

    # Shape-derived VMEM budget -> explicit scoped-VMEM limit (raises v5e's 16 MiB
    # default; stays well under v7x's 64 MiB physical ceiling).
    vmem_need = (2 * tc * B * 4 * H * 2          # double-buffered bf16 gx0 chunk
                 + 2 * 2 * H * 8 * H * 2         # fused weights (default double-buffered)
                 + 2 * 4 * H * 4                 # b1
                 + 2 * B * H * 4                 # output block
                 + B * 7 * H * 4)                # persistent state scratch
    vmem_limit = int(min(max(32 * 1024 * 1024, 2 * vmem_need), 96 * 1024 * 1024))

    # ---- Phase 2 (Pallas): sequential recurrence, chunked over time. ------------
    grid_spec = pltpu.PrefetchScalarGridSpec(
        num_scalar_prefetch=0,
        grid=(T // tc,),
        in_specs=[
            # Packed time-major chunk: last two dims (tc*B, 4H) are sublane/lane
            # dense -> dense HBM DMA, no (8,128)-tile padding waste.
            pl.BlockSpec((None, tc * B, 4 * H), lambda t: (t, 0, 0)),
            # Constant block index -> Pallas skips the per-chunk re-fetch.  At
            # production H on v7x add pipeline_mode=pl.Buffered(1) to these two
            # specs to reclaim the unused second weight buffer's VMEM.
            pl.BlockSpec((2 * H, 8 * H), lambda t: (0, 0)),
            pl.BlockSpec((1, 4 * H), lambda t: (0, 0)),
        ],
        out_specs=pl.BlockSpec((B, H), lambda t: (0, 0)),
        scratch_shapes=[pltpu.VMEM((B, 7 * H), jnp.float32)],             # [r0|c0|h1|c1]
    )

    h1_final = pl.pallas_call(
        functools.partial(lstm_recurrence_kernel, unroll=unroll),
        out_shape=jax.ShapeDtypeStruct((B, H), jnp.float32),
        grid_spec=grid_spec,
        # Strictly serial time recurrence.  (On v7x with large B, add a leading
        # "parallel" batch grid axis to use the second TensorCore.)
        compiler_params=pltpu.CompilerParams(
            dimension_semantics=("arbitrary",),
            vmem_limit_bytes=vmem_limit),
    )(gx0, w_fused, b1)

    # ---- Phase 3 (XLA): one-shot classifier on the final top-layer hidden state.
    return h1_final @ params["wcls"] + params["bcls"]


def init_params(key, n_features, n_hidden, n_classes):
    """PyTorch-style uniform(-1/sqrt(H), 1/sqrt(H)) init.

    LSTM weights stored pre-transposed ((in_dim, 4H)); b_ih + b_hh pre-summed.
    """
    H = n_hidden
    k = 1.0 / jnp.sqrt(jnp.float32(H))
    keys = jax.random.split(key, 10)
    u = lambda kk, shape: jax.random.uniform(kk, shape, jnp.float32, -k, k)
    return {
        "wih0": u(keys[0], (n_features, 4 * H)),
        "whh0": u(keys[1], (H, 4 * H)),
        "b0":   u(keys[2], (1, 4 * H)) + u(keys[3], (1, 4 * H)),
        "wih1": u(keys[4], (H, 4 * H)),
        "whh1": u(keys[5], (H, 4 * H)),
        "b1":   u(keys[6], (1, 4 * H)) + u(keys[7], (1, 4 * H)),
        "wcls": u(keys[8], (H, n_classes)),
        "bcls": u(keys[9], (1, n_classes)),
    }


@functools.partial(jax.jit, static_argnames=("match_kernel_precision",))
def reference_forward(x, params, *, match_kernel_precision=True):
    """Pure-JAX reference (lax.scan over time), eval-mode semantics.

    match_kernel_precision=True mirrors the kernel's precision policy (bf16 gx0
    storage + bf16 matmul operands, f32 accumulation); False is a pure-f32
    semantic reference.
    """
    B, T, F = x.shape
    H = params["whh0"].shape[0]
    wdt = jnp.bfloat16 if match_kernel_precision else jnp.float32

    x_tm = jnp.transpose(x, (1, 0, 2))
    gx0 = jnp.einsum("tbf,fg->tbg", x_tm, params["wih0"],
                     preferred_element_type=jnp.float32) + params["b0"]
    if match_kernel_precision:
        gx0 = gx0.astype(jnp.bfloat16).astype(jnp.float32)
    whh0 = params["whh0"].astype(wdt)
    wih1 = params["wih1"].astype(wdt)
    whh1 = params["whh1"].astype(wdt)
    b1 = params["b1"].astype(jnp.float32)

    def step(carry, gx_t):
        h0, c0, h1, c1 = carry
        g0 = gx_t + jnp.dot(h0.astype(wdt), whh0, preferred_element_type=jnp.float32)
        h0, c0 = _gate_update(g0, c0, H)
        g1 = (jnp.dot(h0.astype(wdt), wih1, preferred_element_type=jnp.float32)
              + jnp.dot(h1.astype(wdt), whh1, preferred_element_type=jnp.float32) + b1)
        h1, c1 = _gate_update(g1, c1, H)
        return (h0, c0, h1, c1), None

    zeros = jnp.zeros((B, H), jnp.float32)
    (_, _, h1, _), _ = jax.lax.scan(step, (zeros, zeros, zeros, zeros), gx0)
    return h1 @ params["wcls"] + params["bcls"]


if __name__ == "__main__":
    B, T, n_features, n_hidden, n_classes = 2, 64, 16, 32, 4

    key = jax.random.PRNGKey(0)
    kx, kp = jax.random.split(key)
    x = jax.random.normal(kx, (B, T, n_features), jnp.float32)
    params = init_params(kp, n_features, n_hidden, n_classes)

    # Default time_chunk=32 with T=64 -> grid=(2,): exercises the grouped/capped
    # unroll inner loop AND the cross-chunk r0/c/h state carry via the VMEM scratch.
    out = jax.block_until_ready(sequence_model_forward(x, params))
    assert out.shape == (B, n_classes)

    # Tight check vs. a reference using the same precision policy as the kernel.
    ref = reference_forward(x, params, match_kernel_precision=True)
    assert jnp.allclose(out, ref, atol=5e-3, rtol=5e-3), (out, ref)

    # Loose sanity check vs. a pure-f32 reference (bf16 operands cost some precision
    # compounded over T=64 steps).
    ref32 = reference_forward(x, params, match_kernel_precision=False)
    assert jnp.allclose(out, ref32, atol=1e-1, rtol=1e-1), (out, ref32)

    # Also exercise a small-chunk configuration (T=8, time_chunk=4 -> grid=(2,),
    # single aligned group per chunk).
    x2 = jax.random.normal(jax.random.PRNGKey(1), (B, 8, n_features), jnp.float32)
    out2 = jax.block_until_ready(sequence_model_forward(x2, params, time_chunk=4))
    ref2 = reference_forward(x2, params, match_kernel_precision=True)
    assert out2.shape == (B, n_classes)
    assert jnp.allclose(out2, ref2, atol=5e-3, rtol=5e-3), (out2, ref2)

    print("KERNEL_OK")
</pallas_src>

<mosaic_0001>
module attributes {stable_mosaic.version = 11 : i64} {
  func.func @lstm_recurrence_kernel(%arg0: i32, %arg1: memref<1x64x128xbf16, #tpu.memory_space<vmem>>, %arg2: memref<64x256xbf16, #tpu.memory_space<vmem>>, %arg3: memref<1x128xf32, #tpu.memory_space<vmem>>, %arg4: memref<2x32xf32, #tpu.memory_space<vmem>>, %arg5: memref<2x224xf32, #tpu.memory_space<vmem>>) attributes {dimension_semantics = [#tpu.dimension_semantics<arbitrary>], iteration_bounds = array<i64: 2>, scalar_prefetch = 0 : i64, scratch_operands = 1 : i64, tpu.core_type = #tpu.core_type<tc>, window_params = [{transform_indices = @transform_0, window_bounds = array<i64: 1, 64, 128>}, {pipeline_mode = #tpu.pipeline_mode<synchronous>, transform_indices = @transform_1, window_bounds = array<i64: 64, 256>}, {pipeline_mode = #tpu.pipeline_mode<synchronous>, transform_indices = @transform_2, window_bounds = array<i64: 1, 128>}, {pipeline_mode = #tpu.pipeline_mode<synchronous>, transform_indices = @transform_3, window_bounds = array<i64: 2, 32>}]} {
    %c0_i32 = arith.constant 0 : i32
    %0 = arith.cmpi eq, %arg0, %c0_i32 : i32
    %1 = arith.extui %0 : i1 to i32
    %c0_i32_0 = arith.constant 0 : i32
    %2 = arith.cmpi ne, %1, %c0_i32_0 : i32
    scf.if %2 {
      %cst = arith.constant 0.000000e+00 : f32
      %19 = vector.broadcast %cst : f32 to vector<2x224xf32>
      %c0_12 = arith.constant 0 : index
      %c0_13 = arith.constant 0 : index
      %20 = vector.load %arg5[%c0_12, %c0_13] : memref<2x224xf32, #tpu.memory_space<vmem>>, vector<2x224xf32>
      tpu.vector_store %arg5[%c0_12, %c0_13], %19 {strides = array<i32>} : memref<2x224xf32, #tpu.memory_space<vmem>>, vector<2x224xf32>,
    } else {
    }
    %c0 = arith.constant 0 : index
    %c0_1 = arith.constant 0 : index
    %3 = vector.load %arg2[%c0, %c0_1] : memref<64x256xbf16, #tpu.memory_space<vmem>>, vector<64x256xbf16>
    %c0_2 = arith.constant 0 : index
    %c0_3 = arith.constant 0 : index
    %4 = vector.load %arg3[%c0_2, %c0_3] : memref<1x128xf32, #tpu.memory_space<vmem>>, vector<1x128xf32>
    %5 = vector.shape_cast %4 : vector<1x128xf32> to vector<1x128xf32>
    %6 = vector.broadcast %5 : vector<1x128xf32> to vector<2x128xf32>
    %c0_4 = arith.constant 0 : index
    %c0_5 = arith.constant 0 : index
    %7 = vector.load %arg5[%c0_4, %c0_5] : memref<2x224xf32, #tpu.memory_space<vmem>>, vector<2x224xf32>
    %8 = vector.extract_strided_slice %7 {offsets = [0, 0], sizes = [2, 128], strides = [1, 1]} : vector<2x224xf32> to vector<2x128xf32>
    %9 = vector.extract_strided_slice %7 {offsets = [0, 128], sizes = [2, 32], strides = [1, 1]} : vector<2x224xf32> to vector<2x32xf32>
    %10 = vector.extract_strided_slice %7 {offsets = [0, 160], sizes = [2, 32], strides = [1, 1]} : vector<2x224xf32> to vector<2x32xf32>
    %11 = vector.extract_strided_slice %7 {offsets = [0, 192], sizes = [2, 32], strides = [1, 1]} : vector<2x224xf32> to vector<2x32xf32>
    %c0_i32_6 = arith.constant 0 : i32
    %c4_i32 = arith.constant 4 : i32
    %12 = arith.addi %c0_i32_6, %c4_i32 : i32
    %c1_i32 = arith.constant 1 : i32
    %13:4 = scf.for %arg6 = %c0_i32_6 to %12 step %c1_i32 iter_args(%arg7 = %8, %arg8 = %9, %arg9 = %10, %arg10 = %11) -> (vector<2x128xf32>, vector<2x32xf32>, vector<2x32xf32>, vector<2x32xf32>)  : i32 {
      %c16_i32 = arith.constant 16 : i32
      %19 = arith.muli %arg6, %c16_i32 : i32
      %20 = tpu.assume_multiple %19, 16 : i32
      %c0_12 = arith.constant 0 : index
      %21 = arith.index_cast %20 : i32 to index
      %c0_13 = arith.constant 0 : index
      %22 = vector.load %arg1[%c0_12, %21, %c0_13] : memref<1x64x128xbf16, #tpu.memory_space<vmem>>, vector<1x16x128xbf16>
      %23 = vector.shape_cast %22 : vector<1x16x128xbf16> to vector<16x128xbf16>
      %24 = arith.extf %23 : vector<16x128xbf16> to vector<16x128xf32>
      %25 = vector.extract_strided_slice %24 {offsets = [0, 0], sizes = [2, 128], strides = [1, 1]} : vector<16x128xf32> to vector<2x128xf32>
      %26 = arith.addf %25, %arg7 : vector<2x128xf32>
      %27 = vector.extract_strided_slice %26 {offsets = [0, 0], sizes = [2, 32], strides = [1, 1]} : vector<2x128xf32> to vector<2x32xf32>
      %cst = arith.constant 5.000000e-01 : f32
      %28 = vector.broadcast %cst : f32 to vector<2x32xf32>
      %29 = arith.mulf %28, %27 : vector<2x32xf32>
      %30 = math.tanh %29 : vector<2x32xf32>
      %cst_14 = arith.constant 5.000000e-01 : f32
      %31 = vector.broadcast %cst_14 : f32 to vector<2x32xf32>
      %32 = arith.mulf %31, %30 : vector<2x32xf32>
      %cst_15 = arith.constant 5.000000e-01 : f32
      %33 = vector.broadcast %cst_15 : f32 to vector<2x32xf32>
      %34 = arith.addf %32, %33 : vector<2x32xf32>
      %35 = vector.extract_strided_slice %26 {offsets = [0, 32], sizes = [2, 32], strides = [1, 1]} : vector<2x128xf32> to vector<2x32xf32>
      %cst_16 = arith.constant 5.000000e-01 : f32
      %36 = vector.broadcast %cst_16 : f32 to vector<2x32xf32>
      %37 = arith.mulf %36, %35 : vector<2x32xf32>
      %38 = math.tanh %37 : vector<2x32xf32>
      %cst_17 = arith.constant 5.000000e-01 : f32
      %39 = vector.broadcast %cst_17 : f32 to vector<2x32xf32>
      %40 = arith.mulf %39, %38 : vector<2x32xf32>
      %cst_18 = arith.constant 5.000000e-01 : f32
      %41 = vector.broadcast %cst_18 : f32 to vector<2x32xf32>
      %42 = arith.addf %40, %41 : vector<2x32xf32>
      %43 = vector.extract_strided_slice %26 {offsets = [0, 64], sizes = [2, 32], strides = [1, 1]} : vector<2x128xf32> to vector<2x32xf32>
      %44 = math.tanh %43 : vector<2x32xf32>
      %45 = vector.extract_strided_slice %26 {offsets = [0, 96], sizes = [2, 32], strides = [1, 1]} : vector<2x128xf32> to vector<2x32xf32>
      %cst_19 = arith.constant 5.000000e-01 : f32
      %46 = vector.broadcast %cst_19 : f32 to vector<2x32xf32>
      %47 = arith.mulf %46, %45 : vector<2x32xf32>
      %48 = math.tanh %47 : vector<2x32xf32>
      %cst_20 = arith.constant 5.000000e-01 : f32
      %49 = vector.broadcast %cst_20 : f32 to vector<2x32xf32>
      %50 = arith.mulf %49, %48 : vector<2x32xf32>
      %cst_21 = arith.constant 5.000000e-01 : f32
      %51 = vector.broadcast %cst_21 : f32 to vector<2x32xf32>
      %52 = arith.addf %50, %51 : vector<2x32xf32>
      %53 = arith.mulf %42, %arg8 : vector<2x32xf32>
      %54 = arith.mulf %34, %44 : vector<2x32xf32>
      %55 = arith.addf %53, %54 : vector<2x32xf32>
      %56 = math.tanh %55 : vector<2x32xf32>
      %57 = arith.mulf %52, %56 : vector<2x32xf32>
      %58 = tpu.concatenate %57, %arg9 in 1 : vector<2x32xf32>, vector<2x32xf32> -> vector<2x64xf32>
      %59 = arith.truncf %58 : vector<2x64xf32> to vector<2x64xbf16>
      %cst_22 = arith.constant dense<0.000000e+00> : vector<2x256xf32>
      %60 = tpu.matmul %59, %3, %cst_22 {dimension_numbers = #tpu.dot_dimension_numbers<[1], [0], [0], [1], [0, 0, 1, 1], [], []>} : vector<2x64xbf16>, vector<64x256xbf16>, vector<2x256xf32> -> vector<2x256xf32>
      %61 = vector.extract_strided_slice %60 {offsets = [0, 0], sizes = [2, 128], strides = [1, 1]} : vector<2x256xf32> to vector<2x128xf32>
      %62 = arith.addf %61, %6 : vector<2x128xf32>
      %63 = vector.extract_strided_slice %62 {offsets = [0, 0], sizes = [2, 32], strides = [1, 1]} : vector<2x128xf32> to vector<2x32xf32>
      %cst_23 = arith.constant 5.000000e-01 : f32
      %64 = vector.broadcast %cst_23 : f32 to vector<2x32xf32>
      %65 = arith.mulf %64, %63 : vector<2x32xf32>
      %66 = math.tanh %65 : vector<2x32xf32>
      %cst_24 = arith.constant 5.000000e-01 : f32
      %67 = vector.broadcast %cst_24 : f32 to vector<2x32xf32>
      %68 = arith.mulf %67, %66 : vector<2x32xf32>
      %cst_25 = arith.constant 5.000000e-01 : f32
      %69 = vector.broadcast %cst_25 : f32 to vector<2x32xf32>
      %70 = arith.addf %68, %69 : vector<2x32xf32>
      %71 = vector.extract_strided_slice %62 {offsets = [0, 32], sizes = [2, 32], strides = [1, 1]} : vector<2x128xf32> to vector<2x32xf32>
      %cst_26 = arith.constant 5.000000e-01 : f32
      %72 = vector.broadcast %cst_26 : f32 to vector<2x32xf32>
      %73 = arith.mulf %72, %71 : vector<2x32xf32>
      %74 = math.tanh %73 : vector<2x32xf32>
      %cst_27 = arith.constant 5.000000e-01 : f32
      %75 = vector.broadcast %cst_27 : f32 to vector<2x32xf32>
      %76 = arith.mulf %75, %74 : vector<2x32xf32>
      %cst_28 = arith.constant 5.000000e-01 : f32
      %77 = vector.broadcast %cst_28 : f32 to vector<2x32xf32>
      %78 = arith.addf %76, %77 : vector<2x32xf32>
      %79 = vector.extract_strided_slice %62 {offsets = [0, 64], sizes = [2, 32], strides = [1, 1]} : vector<2x128xf32> to vector<2x32xf32>
      %80 = math.tanh %79 : vector<2x32xf32>
      %81 = vector.extract_strided_slice %62 {offsets = [0, 96], sizes = [2, 32], strides = [1, 1]} : vector<2x128xf32> to vector<2x32xf32>
      %cst_29 = arith.constant 5.000000e-01 : f32
      %82 = vector.broadcast %cst_29 : f32 to vector<2x32xf32>
      %83 = arith.mulf %82, %81 : vector<2x32xf32>
      %84 = math.tanh %83 : vector<2x32xf32>
      %cst_30 = arith.constant 5.000000e-01 : f32
      %85 = vector.broadcast %cst_30 : f32 to vector<2x32xf32>
      %86 = arith.mulf %85, %84 : vector<2x32xf32>
      %cst_31 = arith.constant 5.000000e-01 : f32
      %87 = vector.broadcast %cst_31 : f32 to vector<2x32xf32>
      %88 = arith.addf %86, %87 : vector<2x32xf32>
      %89 = arith.mulf %78, %arg10 : vector<2x32xf32>
      %90 = arith.mulf %70, %80 : vector<2x32xf32>
      %91 = arith.addf %89, %90 : vector<2x32xf32>
      %92 = math.tanh %91 : vector<2x32xf32>
      %93 = arith.mulf %88, %92 : vector<2x32xf32>
      %94 = vector.extract_strided_slice %60 {offsets = [0, 128], sizes = [2, 128], strides = [1, 1]} : vector<2x256xf32> to vector<2x128xf32>
      %95 = vector.extract_strided_slice %24 {offsets = [2, 0], sizes = [2, 128], strides = [1, 1]} : vector<16x128xf32> to vector<2x128xf32>
      %96 = arith.addf %95, %94 : vector<2x128xf32>
      %97 = vector.extract_strided_slice %96 {offsets = [0, 0], sizes = [2, 32], strides = [1, 1]} : vector<2x128xf32> to vector<2x32xf32>
      %cst_32 = arith.constant 5.000000e-01 : f32
      %98 = vector.broadcast %cst_32 : f32 to vector<2x32xf32>
      %99 = arith.mulf %98, %97 : vector<2x32xf32>
      %100 = math.tanh %99 : vector<2x32xf32>
      %cst_33 = arith.constant 5.000000e-01 : f32
      %101 = vector.broadcast %cst_33 : f32 to vector<2x32xf32>
      %102 = arith.mulf %101, %100 : vector<2x32xf32>
      %cst_34 = arith.constant 5.000000e-01 : f32
      %103 = vector.broadcast %cst_34 : f32 to vector<2x32xf32>
      %104 = arith.addf %102, %103 : vector<2x32xf32>
      %105 = vector.extract_strided_slice %96 {offsets = [0, 32], sizes = [2, 32], strides = [1, 1]} : vector<2x128xf32> to vector<2x32xf32>
      %cst_35 = arith.constant 5.000000e-01 : f32
      %106 = vector.broadcast %cst_35 : f32 to vector<2x32xf32>
      %107 = arith.mulf %106, %105 : vector<2x32xf32>
      %108 = math.tanh %107 : vector<2x32xf32>
      %cst_36 = arith.constant 5.000000e-01 : f32
      %109 = vector.broadcast %cst_36 : f32 to vector<2x32xf32>
      %110 = arith.mulf %109, %108 : vector<2x32xf32>
      %cst_37 = arith.constant 5.000000e-01 : f32
      %111 = vector.broadcast %cst_37 : f32 to vector<2x32xf32>
      %112 = arith.addf %110, %111 : vector<2x32xf32>
      %113 = vector.extract_strided_slice %96 {offsets = [0, 64], sizes = [2, 32], strides = [1, 1]} : vector<2x128xf32> to vector<2x32xf32>
      %114 = math.tanh %113 : vector<2x32xf32>
      %115 = vector.extract_strided_slice %96 {offsets = [0, 96], sizes = [2, 32], strides = [1, 1]} : vector<2x128xf32> to vector<2x32xf32>
      %cst_38 = arith.constant 5.000000e-01 : f32
      %116 = vector.broadcast %cst_38 : f32 to vector<2x32xf32>
      %117 = arith.mulf %116, %115 : vector<2x32xf32>
      %118 = math.tanh %117 : vector<2x32xf32>
      %cst_39 = arith.constant 5.000000e-01 : f32
      %119 = vector.broadcast %cst_39 : f32 to vector<2x32xf32>
      %120 = arith.mulf %119, %118 : vector<2x32xf32>
      %cst_40 = arith.constant 5.000000e-01 : f32
      %121 = vector.broadcast %cst_40 : f32 to vector<2x32xf32>
      %122 = arith.addf %120, %121 : vector<2x32xf32>
      %123 = arith.mulf %112, %55 : vector<2x32xf32>
      %124 = arith.mulf %104, %114 : vector<2x32xf32>
      %125 = arith.addf %123, %124 : vector<2x32xf32>
      %126 = math.tanh %125 : vector<2x32xf32>
      %127 = arith.mulf %122, %126 : vector<2x32xf32>
      %128 = tpu.concatenate %127, %93 in 1 : vector<2x32xf32>, vector<2x32xf32> -> vector<2x64xf32>
      %129 = arith.truncf %128 : vector<2x64xf32> to vector<2x64xbf16>
      %cst_41 = arith.constant dense<0.000000e+00> : vector<2x256xf32>
      %130 = tpu.matmul %129, %3, %cst_41 {dimension_numbers = #tpu.dot_dimension_numbers<[1], [0], [0], [1], [0, 0, 1, 1], [], []>} : vector<2x64xbf16>, vector<64x256xbf16>, vector<2x256xf32> -> vector<2x256xf32>
      %131 = vector.extract_strided_slice %130 {offsets = [0, 0], sizes = [2, 128], strides = [1, 1]} : vector<2x256xf32> to vector<2x128xf32>
      %132 = arith.addf %131, %6 : vector<2x128xf32>
      %133 = vector.extract_strided_slice %132 {offsets = [0, 0], sizes = [2, 32], strides = [1, 1]} : vector<2x128xf32> to vector<2x32xf32>
      %cst_42 = arith.constant 5.000000e-01 : f32
      %134 = vector.broadcast %cst_42 : f32 to vector<2x32xf32>
      %135 = arith.mulf %134, %133 : vector<2x32xf32>
      %136 = math.tanh %135 : vector<2x32xf32>
      %cst_43 = arith.constant 5.000000e-01 : f32
      %137 = vector.broadcast %cst_43 : f32 to vector<2x32xf32>
      %138 = arith.mulf %137, %136 : vector<2x32xf32>
      %cst_44 = arith.constant 5.000000e-01 : f32
      %139 = vector.broadcast %cst_44 : f32 to vector<2x32xf32>
      %140 = arith.addf %138, %139 : vector<2x32xf32>
      %141 = vector.extract_strided_slice %132 {offsets = [0, 32], sizes = [2, 32], strides = [1, 1]} : vector<2x128xf32> to vector<2x32xf32>
      %cst_45 = arith.constant 5.000000e-01 : f32
      %142 = vector.broadcast %cst_45 : f32 to vector<2x32xf32>
      %143 = arith.mulf %142, %141 : vector<2x32xf32>
      %144 = math.tanh %143 : vector<2x32xf32>
      %cst_46 = arith.constant 5.000000e-01 : f32
      %145 = vector.broadcast %cst_46 : f32 to vector<2x32xf32>
      %146 = arith.mulf %145, %144 : vector<2x32xf32>
      %cst_47 = arith.constant 5.000000e-01 : f32
      %147 = vector.broadcast %cst_47 : f32 to vector<2x32xf32>
      %148 = arith.addf %146, %147 : vector<2x32xf32>
      %149 = vector.extract_strided_slice %132 {offsets = [0, 64], sizes = [2, 32], strides = [1, 1]} : vector<2x128xf32> to vector<2x32xf32>
      %150 = math.tanh %149 : vector<2x32xf32>
      %151 = vector.extract_strided_slice %132 {offsets = [0, 96], sizes = [2, 32], strides = [1, 1]} : vector<2x128xf32> to vector<2x32xf32>
      %cst_48 = arith.constant 5.000000e-01 : f32
      %152 = vector.broadcast %cst_48 : f32 to vector<2x32xf32>
      %153 = arith.mulf %152, %151 : vector<2x32xf32>
      %154 = math.tanh %153 : vector<2x32xf32>
      %cst_49 = arith.constant 5.000000e-01 : f32
      %155 = vector.broadcast %cst_49 : f32 to vector<2x32xf32>
      %156 = arith.mulf %155, %154 : vector<2x32xf32>
      %cst_50 = arith.constant 5.000000e-01 : f32
      %157 = vector.broadcast %cst_50 : f32 to vector<2x32xf32>
      %158 = arith.addf %156, %157 : vector<2x32xf32>
      %159 = arith.mulf %148, %91 : vector<2x32xf32>
      %160 = arith.mulf %140, %150 : vector<2x32xf32>
      %161 = arith.addf %159, %160 : vector<2x32xf32>
      %162 = math.tanh %161 : vector<2x32xf32>
      %163 = arith.mulf %158, %162 : vector<2x32xf32>
      %164 = vector.extract_strided_slice %130 {offsets = [0, 128], sizes = [2, 128], strides = [1, 1]} : vector<2x256xf32> to vector<2x128xf32>
      %165 = vector.extract_strided_slice %24 {offsets = [4, 0], sizes = [2, 128], strides = [1, 1]} : vector<16x128xf32> to vector<2x128xf32>
      %166 = arith.addf %165, %164 : vector<2x128xf32>
      %167 = vector.extract_strided_slice %166 {offsets = [0, 0], sizes = [2, 32], strides = [1, 1]} : vector<2x128xf32> to vector<2x32xf32>
      %cst_51 = arith.constant 5.000000e-01 : f32
      %168 = vector.broadcast %cst_51 : f32 to vector<2x32xf32>
      %169 = arith.mulf %168, %167 : vector<2x32xf32>
      %170 = math.tanh %169 : vector<2x32xf32>
      %cst_52 = arith.constant 5.000000e-01 : f32
      %171 = vector.broadcast %cst_52 : f32 to vector<2x32xf32>
      %172 = arith.mulf %171, %170 : vector<2x32xf32>
      %cst_53 = arith.constant 5.000000e-01 : f32
      %173 = vector.broadcast %cst_53 : f32 to vector<2x32xf32>
      %174 = arith.addf %172, %173 : vector<2x32xf32>
      %175 = vector.extract_strided_slice %166 {offsets = [0, 32], sizes = [2, 32], strides = [1, 1]} : vector<2x128xf32> to vector<2x32xf32>
      %cst_54 = arith.constant 5.000000e-01 : f32
      %176 = vector.broadcast %cst_54 : f32 to vector<2x32xf32>
      %177 = arith.mulf %176, %175 : vector<2x32xf32>
      %178 = math.tanh %177 : vector<2x32xf32>
      %cst_55 = arith.constant 5.000000e-01 : f32
      %179 = vector.broadcast %cst_55 : f32 to vector<2x32xf32>
      %180 = arith.mulf %179, %178 : vector<2x32xf32>
      %cst_56 = arith.constant 5.000000e-01 : f32
      %181 = vector.broadcast %cst_56 : f32 to vector<2x32xf32>
      %182 = arith.addf %180, %181 : vector<2x32xf32>
      %183 = vector.extract_strided_slice %166 {offsets = [0, 64], sizes = [2, 32], strides = [1, 1]} : vector<2x128xf32> to vector<2x32xf32>
      %184 = math.tanh %183 : vector<2x32xf32>
      %185 = vector.extract_strided_slice %166 {offsets = [0, 96], sizes = [2, 32], strides = [1, 1]} : vector<2x128xf32> to vector<2x32xf32>
      %cst_57 = arith.constant 5.000000e-01 : f32
      %186 = vector.broadcast %cst_57 : f32 to vector<2x32xf32>
      %187 = arith.mulf %186, %185 : vector<2x32xf32>
      %188 = math.tanh %187 : vector<2x32xf32>
      %cst_58 = arith.constant 5.000000e-01 : f32
      %189 = vector.broadcast %cst_58 : f32 to vector<2x32xf32>
      %190 = arith.mulf %189, %188 : vector<2x32xf32>
      %cst_59 = arith.constant 5.000000e-01 : f32
      %191 = vector.broadcast %cst_59 : f32 to vector<2x32xf32>
      %192 = arith.addf %190, %191 : vector<2x32xf32>
      %193 = arith.mulf %182, %125 : vector<2x32xf32>
      %194 = arith.mulf %174, %184 : vector<2x32xf32>
      %195 = arith.addf %193, %194 : vector<2x32xf32>
      %196 = math.tanh %195 : vector<2x32xf32>
      %197 = arith.mulf %192, %196 : vector<2x32xf32>
      %198 = tpu.concatenate %197, %163 in 1 : vector<2x32xf32>, vector<2x32xf32> -> vector<2x64xf32>
      %199 = arith.truncf %198 : vector<2x64xf32> to vector<2x64xbf16>
      %cst_60 = arith.constant dense<0.000000e+00> : vector<2x256xf32>
      %200 = tpu.matmul %199, %3, %cst_60 {dimension_numbers = #tpu.dot_dimension_numbers<[1], [0], [0], [1], [0, 0, 1, 1], [], []>} : vector<2x64xbf16>, vector<64x256xbf16>, vector<2x256xf32> -> vector<2x256xf32>
      %201 = vector.extract_strided_slice %200 {offsets = [0, 0], sizes = [2, 128], strides = [1, 1]} : vector<2x256xf32> to vector<2x128xf32>
      %202 = arith.addf %201, %6 : vector<2x128xf32>
      %203 = vector.extract_strided_slice %202 {offsets = [0, 0], sizes = [2, 32], strides = [1, 1]} : vector<2x128xf32> to vector<2x32xf32>
      %cst_61 = arith.constant 5.000000e-01 : f32
      %204 = vector.broadcast %cst_61 : f32 to vector<2x32xf32>
      %205 = arith.mulf %204, %203 : vector<2x32xf32>
      %206 = math.tanh %205 : vector<2x32xf32>
      %cst_62 = arith.constant 5.000000e-01 : f32
      %207 = vector.broadcast %cst_62 : f32 to vector<2x32xf32>
      %208 = arith.mulf %207, %206 : vector<2x32xf32>
      %cst_63 = arith.constant 5.000000e-01 : f32
      %209 = vector.broadcast %cst_63 : f32 to vector<2x32xf32>
      %210 = arith.addf %208, %209 : vector<2x32xf32>
      %211 = vector.extract_strided_slice %202 {offsets = [0, 32], sizes = [2, 32], strides = [1, 1]} : vector<2x128xf32> to vector<2x32xf32>
      %cst_64 = arith.constant 5.000000e-01 : f32
      %212 = vector.broadcast %cst_64 : f32 to vector<2x32xf32>
      %213 = arith.mulf %212, %211 : vector<2x32xf32>
      %214 = math.tanh %213 : vector<2x32xf32>
      %cst_65 = arith.constant 5.000000e-01 : f32
      %215 = vector.broadcast %cst_65 : f32 to vector<2x32xf32>
      %216 = arith.mulf %215, %214 : vector<2x32xf32>
      %cst_66 = arith.constant 5.000000e-01 : f32
      %217 = vector.broadcast %cst_66 : f32 to vector<2x32xf32>
      %218 = arith.addf %216, %217 : vector<2x32xf32>
      %219 = vector.extract_strided_slice %202 {offsets = [0, 64], sizes = [2, 32], strides = [1, 1]} : vector<2x128xf32> to vector<2x32xf32>
      %220 = math.tanh %219 : vector<2x32xf32>
      %221 = vector.extract_strided_slice %202 {offsets = [0, 96], sizes = [2, 32], strides = [1, 1]} : vector<2x128xf32> to vector<2x32xf32>
      %cst_67 = arith.constant 5.000000e-01 : f32
      %222 = vector.broadcast %cst_67 : f32 to vector<2x32xf32>
      %223 = arith.mulf %222, %221 : vector<2x32xf32>
      %224 = math.tanh %223 : vector<2x32xf32>
      %cst_68 = arith.constant 5.000000e-01 : f32
      %225 = vector.broadcast %cst_68 : f32 to vector<2x32xf32>
      %226 = arith.mulf %225, %224 : vector<2x32xf32>
      %cst_69 = arith.constant 5.000000e-01 : f32
      %227 = vector.broadcast %cst_69 : f32 to vector<2x32xf32>
      %228 = arith.addf %226, %227 : vector<2x32xf32>
      %229 = arith.mulf %218, %161 : vector<2x32xf32>
      %230 = arith.mulf %210, %220 : vector<2x32xf32>
      %231 = arith.addf %229, %230 : vector<2x32xf32>
      %232 = math.tanh %231 : vector<2x32xf32>
      %233 = arith.mulf %228, %232 : vector<2x32xf32>
      %234 = vector.extract_strided_slice %200 {offsets = [0, 128], sizes = [2, 128], strides = [1, 1]} : vector<2x256xf32> to vector<2x128xf32>
      %235 = vector.extract_strided_slice %24 {offsets = [6, 0], sizes = [2, 128], strides = [1, 1]} : vector<16x128xf32> to vector<2x128xf32>
      %236 = arith.addf %235, %234 : vector<2x128xf32>
      %237 = vector.extract_strided_slice %236 {offsets = [0, 0], sizes = [2, 32], strides = [1, 1]} : vector<2x128xf32> to vector<2x32xf32>
      %cst_70 = arith.constant 5.000000e-01 : f32
      %238 = vector.broadcast %cst_70 : f32 to vector<2x32xf32>
      %239 = arith.mulf %238, %237 : vector<2x32xf32>
      %240 = math.tanh %239 : vector<2x32xf32>
      %cst_71 = arith.constant 5.000000e-01 : f32
      %241 = vector.broadcast %cst_71 : f32 to vector<2x32xf32>
      %242 = arith.mulf %241, %240 : vector<2x32xf32>
      %cst_72 = arith.constant 5.000000e-01 : f32
      %243 = vector.broadcast %cst_72 : f32 to vector<2x32xf32>
      %244 = arith.addf %242, %243 : vector<2x32xf32>
      %245 = vector.extract_strided_slice %236 {offsets = [0, 32], sizes = [2, 32], strides = [1, 1]} : vector<2x128xf32> to vector<2x32xf32>
      %cst_73 = arith.constant 5.000000e-01 : f32
      %246 = vector.broadcast %cst_73 : f32 to vector<2x32xf32>
      %247 = arith.mulf %246, %245 : vector<2x32xf32>
      %248 = math.tanh %247 : vector<2x32xf32>
      %cst_74 = arith.constant 5.000000e-01 : f32
      %249 = vector.broadcast %cst_74 : f32 to vector<2x32xf32>
      %250 = arith.mulf %249, %248 : vector<2x32xf32>
      %cst_75 = arith.constant 5.000000e-01 : f32
      %251 = vector.broadcast %cst_75 : f32 to vector<2x32xf32>
      %252 = arith.addf %250, %251 : vector<2x32xf32>
      %253 = vector.extract_strided_slice %236 {offsets = [0, 64], sizes = [2, 32], strides = [1, 1]} : vector<2x128xf32> to vector<2x32xf32>
      %254 = math.tanh %253 : vector<2x32xf32>
      %255 = vector.extract_strided_slice %236 {offsets = [0, 96], sizes = [2, 32], strides = [1, 1]} : vector<2x128xf32> to vector<2x32xf32>
      %cst_76 = arith.constant 5.000000e-01 : f32
      %256 = vector.broadcast %cst_76 : f32 to vector<2x32xf32>
      %257 = arith.mulf %256, %255 : vector<2x32xf32>
      %258 = math.tanh %257 : vector<2x32xf32>
      %cst_77 = arith.constant 5.000000e-01 : f32
      %259 = vector.broadcast %cst_77 : f32 to vector<2x32xf32>
      %260 = arith.mulf %259, %258 : vector<2x32xf32>
      %cst_78 = arith.constant 5.000000e-01 : f32
      %261 = vector.broadcast %cst_78 : f32 to vector<2x32xf32>
      %262 = arith.addf %260, %261 : vector<2x32xf32>
      %263 = arith.mulf %252, %195 : vector<2x32xf32>
      %264 = arith.mulf %244, %254 : vector<2x32xf32>
      %265 = arith.addf %263, %264 : vector<2x32xf32>
      %266 = math.tanh %265 : vector<2x32xf32>
      %267 = arith.mulf %262, %266 : vector<2x32xf32>
      %268 = tpu.concatenate %267, %233 in 1 : vector<2x32xf32>, vector<2x32xf32> -> vector<2x64xf32>
      %269 = arith.truncf %268 : vector<2x64xf32> to vector<2x64xbf16>
      %cst_79 = arith.constant dense<0.000000e+00> : vector<2x256xf32>
      %270 = tpu.matmul %269, %3, %cst_79 {dimension_numbers = #tpu.dot_dimension_numbers<[1], [0], [0], [1], [0, 0, 1, 1], [], []>} : vector<2x64xbf16>, vector<64x256xbf16>, vector<2x256xf32> -> vector<2x256xf32>
      %271 = vector.extract_strided_slice %270 {offsets = [0, 0], sizes = [2, 128], strides = [1, 1]} : vector<2x256xf32> to vector<2x128xf32>
      %272 = arith.addf %271, %6 : vector<2x128xf32>
      %273 = vector.extract_strided_slice %272 {offsets = [0, 0], sizes = [2, 32], strides = [1, 1]} : vector<2x128xf32> to vector<2x32xf32>
      %cst_80 = arith.constant 5.000000e-01 : f32
      %274 = vector.broadcast %cst_80 : f32 to vector<2x32xf32>
      %275 = arith.mulf %274, %273 : vector<2x32xf32>
      %276 = math.tanh %275 : vector<2x32xf32>
      %cst_81 = arith.constant 5.000000e-01 : f32
      %277 = vector.broadcast %cst_81 : f32 to vector<2x32xf32>
      %278 = arith.mulf %277, %276 : vector<2x32xf32>
      %cst_82 = arith.constant 5.000000e-01 : f32
      %279 = vector.broadcast %cst_82 : f32 to vector<2x32xf32>
      %280 = arith.addf %278, %279 : vector<2x32xf32>
      %281 = vector.extract_strided_slice %272 {offsets = [0, 32], sizes = [2, 32], strides = [1, 1]} : vector<2x128xf32> to vector<2x32xf32>
      %cst_83 = arith.constant 5.000000e-01 : f32
      %282 = vector.broadcast %cst_83 : f32 to vector<2x32xf32>
      %283 = arith.mulf %282, %281 : vector<2x32xf32>
      %284 = math.tanh %283 : vector<2x32xf32>
      %cst_84 = arith.constant 5.000000e-01 : f32
      %285 = vector.broadcast %cst_84 : f32 to vector<2x32xf32>
      %286 = arith.mulf %285, %284 : vector<2x32xf32>
      %cst_85 = arith.constant 5.000000e-01 : f32
      %287 = vector.broadcast %cst_85 : f32 to vector<2x32xf32>
      %288 = arith.addf %286, %287 : vector<2x32xf32>
      %289 = vector.extract_strided_slice %272 {offsets = [0, 64], sizes = [2, 32], strides = [1, 1]} : vector<2x128xf32> to vector<2x32xf32>
      %290 = math.tanh %289 : vector<2x32xf32>
      %291 = vector.extract_strided_slice %272 {offsets = [0, 96], sizes = [2, 32], strides = [1, 1]} : vector<2x128xf32> to vector<2x32xf32>
      %cst_86 = arith.constant 5.000000e-01 : f32
      %292 = vector.broadcast %cst_86 : f32 to vector<2x32xf32>
      %293 = arith.mulf %292, %291 : vector<2x32xf32>
      %294 = math.tanh %293 : vector<2x32xf32>
      %cst_87 = arith.constant 5.000000e-01 : f32
      %295 = vector.broadcast %cst_87 : f32 to vector<2x32xf32>
      %296 = arith.mulf %295, %294 : vector<2x32xf32>
      %cst_88 = arith.constant 5.000000e-01 : f32
      %297 = vector.broadcast %cst_88 : f32 to vector<2x32xf32>
      %298 = arith.addf %296, %297 : vector<2x32xf32>
      %299 = arith.mulf %288, %231 : vector<2x32xf32>
      %300 = arith.mulf %280, %290 : vector<2x32xf32>
      %301 = arith.addf %299, %300 : vector<2x32xf32>
      %302 = math.tanh %301 : vector<2x32xf32>
      %303 = arith.mulf %298, %302 : vector<2x32xf32>
      %304 = vector.extract_strided_slice %270 {offsets = [0, 128], sizes = [2, 128], strides = [1, 1]} : vector<2x256xf32> to vector<2x128xf32>
      %305 = vector.extract_strided_slice %24 {offsets = [8, 0], sizes = [2, 128], strides = [1, 1]} : vector<16x128xf32> to vector<2x128xf32>
      %306 = arith.addf %305, %304 : vector<2x128xf32>
      %307 = vector.extract_strided_slice %306 {offsets = [0, 0], sizes = [2, 32], strides = [1, 1]} : vector<2x128xf32> to vector<2x32xf32>
      %cst_89 = arith.constant 5.000000e-01 : f32
      %308 = vector.broadcast %cst_89 : f32 to vector<2x32xf32>
      %309 = arith.mulf %308, %307 : vector<2x32xf32>
      %310 = math.tanh %309 : vector<2x32xf32>
      %cst_90 = arith.constant 5.000000e-01 : f32
      %311 = vector.broadcast %cst_90 : f32 to vector<2x32xf32>
      %312 = arith.mulf %311, %310 : vector<2x32xf32>
      %cst_91 = arith.constant 5.000000e-01 : f32
      %313 = vector.broadcast %cst_91 : f32 to vector<2x32xf32>
      %314 = arith.addf %312, %313 : vector<2x32xf32>
      %315 = vector.extract_strided_slice %306 {offsets = [0, 32], sizes = [2, 32], strides = [1, 1]} : vector<2x128xf32> to vector<2x32xf32>
      %cst_92 = arith.constant 5.000000e-01 : f32
      %316 = vector.broadcast %cst_92 : f32 to vector<2x32xf32>
      %317 = arith.mulf %316, %315 : vector<2x32xf32>
      %318 = math.tanh %317 : vector<2x32xf32>
      %cst_93 = arith.constant 5.000000e-01 : f32
      %319 = vector.broadcast %cst_93 : f32 to vector<2x32xf32>
      %320 = arith.mulf %319, %318 : vector<2x32xf32>
      %cst_94 = arith.constant 5.000000e-01 : f32
      %321 = vector.broadcast %cst_94 : f32 to vector<2x32xf32>
      %322 = arith.addf %320, %321 : vector<2x32xf32>
      %323 = vector.extract_strided_slice %306 {offsets = [0, 64], sizes = [2, 32], strides = [1, 1]} : vector<2x128xf32> to vector<2x32xf32>
      %324 = math.tanh %323 : vector<2x32xf32>
      %325 = vector.extract_strided_slice %306 {offsets = [0, 96], sizes = [2, 32], strides = [1, 1]} : vector<2x128xf32> to vector<2x32xf32>
      %cst_95 = arith.constant 5.000000e-01 : f32
      %326 = vector.broadcast %cst_95 : f32 to vector<2x32xf32>
      %327 = arith.mulf %326, %325 : vector<2x32xf32>
      %328 = math.tanh %327 : vector<2x32xf32>
      %cst_96 = arith.constant 5.000000e-01 : f32
      %329 = vector.broadcast %cst_96 : f32 to vector<2x32xf32>
      %330 = arith.mulf %329, %328 : vector<2x32xf32>
      %cst_97 = arith.constant 5.000000e-01 : f32
      %331 = vector.broadcast %cst_97 : f32 to vector<2x32xf32>
      %332 = arith.addf %330, %331 : vector<2x32xf32>
      %333 = arith.mulf %322, %265 : vector<2x32xf32>
      %334 = arith.mulf %314, %324 : vector<2x32xf32>
      %335 = arith.addf %333, %334 : vector<2x32xf32>
      %336 = math.tanh %335 : vector<2x32xf32>
      %337 = arith.mulf %332, %336 : vector<2x32xf32>
      %338 = tpu.concatenate %337, %303 in 1 : vector<2x32xf32>, vector<2x32xf32> -> vector<2x64xf32>
      %339 = arith.truncf %338 : vector<2x64xf32> to vector<2x64xbf16>
      %cst_98 = arith.constant dense<0.000000e+00> : vector<2x256xf32>
      %340 = tpu.matmul %339, %3, %cst_98 {dimension_numbers = #tpu.dot_dimension_numbers<[1], [0], [0], [1], [0, 0, 1, 1], [], []>} : vector<2x64xbf16>, vector<64x256xbf16>, vector<2x256xf32> -> vector<2x256xf32>
      %341 = vector.extract_strided_slice %340 {offsets = [0, 0], sizes = [2, 128], strides = [1, 1]} : vector<2x256xf32> to vector<2x128xf32>
      %342 = arith.addf %341, %6 : vector<2x128xf32>
      %343 = vector.extract_strided_slice %342 {offsets = [0, 0], sizes = [2, 32], strides = [1, 1]} : vector<2x128xf32> to vector<2x32xf32>
      %cst_99 = arith.constant 5.000000e-01 : f32
      %344 = vector.broadcast %cst_99 : f32 to vector<2x32xf32>
      %345 = arith.mulf %344, %343 : vector<2x32xf32>
      %346 = math.tanh %345 : vector<2x32xf32>
      %cst_100 = arith.constant 5.000000e-01 : f32
      %347 = vector.broadcast %cst_100 : f32 to vector<2x32xf32>
      %348 = arith.mulf %347, %346 : vector<2x32xf32>
      %cst_101 = arith.constant 5.000000e-01 : f32
      %349 = vector.broadcast %cst_101 : f32 to vector<2x32xf32>
      %350 = arith.addf %348, %349 : vector<2x32xf32>
      %351 = vector.extract_strided_slice %342 {offsets = [0, 32], sizes = [2, 32], strides = [1, 1]} : vector<2x128xf32> to vector<2x32xf32>
      %cst_102 = arith.constant 5.000000e-01 : f32
      %352 = vector.broadcast %cst_102 : f32 to vector<2x32xf32>
      %353 = arith.mulf %352, %351 : vector<2x32xf32>
      %354 = math.tanh %353 : vector<2x32xf32>
      %cst_103 = arith.constant 5.000000e-01 : f32
      %355 = vector.broadcast %cst_103 : f32 to vector<2x32xf32>
      %356 = arith.mulf %355, %354 : vector<2x32xf32>
      %cst_104 = arith.constant 5.000000e-01 : f32
      %357 = vector.broadcast %cst_104 : f32 to vector<2x32xf32>
      %358 = arith.addf %356, %357 : vector<2x32xf32>
      %359 = vector.extract_strided_slice %342 {offsets = [0, 64], sizes = [2, 32], strides = [1, 1]} : vector<2x128xf32> to vector<2x32xf32>
      %360 = math.tanh %359 : vector<2x32xf32>
      %361 = vector.extract_strided_slice %342 {offsets = [0, 96], sizes = [2, 32], strides = [1, 1]} : vector<2x128xf32> to vector<2x32xf32>
      %cst_105 = arith.constant 5.000000e-01 : f32
      %362 = vector.broadcast %cst_105 : f32 to vector<2x32xf32>
      %363 = arith.mulf %362, %361 : vector<2x32xf32>
      %364 = math.tanh %363 : vector<2x32xf32>
      %cst_106 = arith.constant 5.000000e-01 : f32
      %365 = vector.broadcast %cst_106 : f32 to vector<2x32xf32>
      %366 = arith.mulf %365, %364 : vector<2x32xf32>
      %cst_107 = arith.constant 5.000000e-01 : f32
      %367 = vector.broadcast %cst_107 : f32 to vector<2x32xf32>
      %368 = arith.addf %366, %367 : vector<2x32xf32>
      %369 = arith.mulf %358, %301 : vector<2x32xf32>
      %370 = arith.mulf %350, %360 : vector<2x32xf32>
      %371 = arith.addf %369, %370 : vector<2x32xf32>
      %372 = math.tanh %371 : vector<2x32xf32>
      %373 = arith.mulf %368, %372 : vector<2x32xf32>
      %374 = vector.extract_strided_slice %340 {offsets = [0, 128], sizes = [2, 128], strides = [1, 1]} : vector<2x256xf32> to vector<2x128xf32>
      %375 = vector.extract_strided_slice %24 {offsets = [10, 0], sizes = [2, 128], strides = [1, 1]} : vector<16x128xf32> to vector<2x128xf32>
      %376 = arith.addf %375, %374 : vector<2x128xf32>
      %377 = vector.extract_strided_slice %376 {offsets = [0, 0], sizes = [2, 32], strides = [1, 1]} : vector<2x128xf32> to vector<2x32xf32>
      %cst_108 = arith.constant 5.000000e-01 : f32
      %378 = vector.broadcast %cst_108 : f32 to vector<2x32xf32>
      %379 = arith.mulf %378, %377 : vector<2x32xf32>
      %380 = math.tanh %379 : vector<2x32xf32>
      %cst_109 = arith.constant 5.000000e-01 : f32
      %381 = vector.broadcast %cst_109 : f32 to vector<2x32xf32>
      %382 = arith.mulf %381, %380 : vector<2x32xf32>
      %cst_110 = arith.constant 5.000000e-01 : f32
      %383 = vector.broadcast %cst_110 : f32 to vector<2x32xf32>
      %384 = arith.addf %382, %383 : vector<2x32xf32>
      %385 = vector.extract_strided_slice %376 {offsets = [0, 32], sizes = [2, 32], strides = [1, 1]} : vector<2x128xf32> to vector<2x32xf32>
      %cst_111 = arith.constant 5.000000e-01 : f32
      %386 = vector.broadcast %cst_111 : f32 to vector<2x32xf32>
      %387 = arith.mulf %386, %385 : vector<2x32xf32>
      %388 = math.tanh %387 : vector<2x32xf32>
      %cst_112 = arith.constant 5.000000e-01 : f32
      %389 = vector.broadcast %cst_112 : f32 to vector<2x32xf32>
      %390 = arith.mulf %389, %388 : vector<2x32xf32>
      %cst_113 = arith.constant 5.000000e-01 : f32
      %391 = vector.broadcast %cst_113 : f32 to vector<2x32xf32>
      %392 = arith.addf %390, %391 : vector<2x32xf32>
      %393 = vector.extract_strided_slice %376 {offsets = [0, 64], sizes = [2, 32], strides = [1, 1]} : vector<2x128xf32> to vector<2x32xf32>
      %394 = math.tanh %393 : vector<2x32xf32>
      %395 = vector.extract_strided_slice %376 {offsets = [0, 96], sizes = [2, 32], strides = [1, 1]} : vector<2x128xf32> to vector<2x32xf32>
      %cst_114 = arith.constant 5.000000e-01 : f32
      %396 = vector.broadcast %cst_114 : f32 to vector<2x32xf32>
      %397 = arith.mulf %396, %395 : vector<2x32xf32>
      %398 = math.tanh %397 : vector<2x32xf32>
      %cst_115 = arith.constant 5.000000e-01 : f32
      %399 = vector.broadcast %cst_115 : f32 to vector<2x32xf32>
      %400 = arith.mulf %399, %398 : vector<2x32xf32>
      %cst_116 = arith.constant 5.000000e-01 : f32
      %401 = vector.broadcast %cst_116 : f32 to vector<2x32xf32>
      %402 = arith.addf %400, %401 : vector<2x32xf32>
      %403 = arith.mulf %392, %335 : vector<2x32xf32>
      %404 = arith.mulf %384, %394 : vector<2x32xf32>
      %405 = arith.addf %403, %404 : vector<2x32xf32>
      %406 = math.tanh %405 : vector<2x32xf32>
      %407 = arith.mulf %402, %406 : vector<2x32xf32>
      %408 = tpu.concatenate %407, %373 in 1 : vector<2x32xf32>, vector<2x32xf32> -> vector<2x64xf32>
      %409 = arith.truncf %408 : vector<2x64xf32> to vector<2x64xbf16>
      %cst_117 = arith.constant dense<0.000000e+00> : vector<2x256xf32>
      %410 = tpu.matmul %409, %3, %cst_117 {dimension_numbers = #tpu.dot_dimension_numbers<[1], [0], [0], [1], [0, 0, 1, 1], [], []>} : vector<2x64xbf16>, vector<64x256xbf16>, vector<2x256xf32> -> vector<2x256xf32>
      %411 = vector.extract_strided_slice %410 {offsets = [0, 0], sizes = [2, 128], strides = [1, 1]} : vector<2x256xf32> to vector<2x128xf32>
      %412 = arith.addf %411, %6 : vector<2x128xf32>
      %413 = vector.extract_strided_slice %412 {offsets = [0, 0], sizes = [2, 32], strides = [1, 1]} : vector<2x128xf32> to vector<2x32xf32>
      %cst_118 = arith.constant 5.000000e-01 : f32
      %414 = vector.broadcast %cst_118 : f32 to vector<2x32xf32>
      %415 = arith.mulf %414, %413 : vector<2x32xf32>
      %416 = math.tanh %415 : vector<2x32xf32>
      %cst_119 = arith.constant 5.000000e-01 : f32
      %417 = vector.broadcast %cst_119 : f32 to vector<2x32xf32>
      %418 = arith.mulf %417, %416 : vector<2x32xf32>
      %cst_120 = arith.constant 5.000000e-01 : f32
      %419 = vector.broadcast %cst_120 : f32 to vector<2x32xf32>
      %420 = arith.addf %418, %419 : vector<2x32xf32>
      %421 = vector.extract_strided_slice %412 {offsets = [0, 32], sizes = [2, 32], strides = [1, 1]} : vector<2x128xf32> to vector<2x32xf32>
      %cst_121 = arith.constant 5.000000e-01 : f32
      %422 = vector.broadcast %cst_121 : f32 to vector<2x32xf32>
      %423 = arith.mulf %422, %421 : vector<2x32xf32>
      %424 = math.tanh %423 : vector<2x32xf32>
      %cst_122 = arith.constant 5.000000e-01 : f32
      %425 = vector.broadcast %cst_122 : f32 to vector<2x32xf32>
      %426 = arith.mulf %425, %424 : vector<2x32xf32>
      %cst_123 = arith.constant 5.000000e-01 : f32
      %427 = vector.broadcast %cst_123 : f32 to vector<2x32xf32>
      %428 = arith.addf %426, %427 : vector<2x32xf32>
      %429 = vector.extract_strided_slice %412 {offsets = [0, 64], sizes = [2, 32], strides = [1, 1]} : vector<2x128xf32> to vector<2x32xf32>
      %430 = math.tanh %429 : vector<2x32xf32>
      %431 = vector.extract_strided_slice %412 {offsets = [0, 96], sizes = [2, 32], strides = [1, 1]} : vector<2x128xf32> to vector<2x32xf32>
      %cst_124 = arith.constant 5.000000e-01 : f32
      %432 = vector.broadcast %cst_124 : f32 to vector<2x32xf32>
      %433 = arith.mulf %432, %431 : vector<2x32xf32>
      %434 = math.tanh %433 : vector<2x32xf32>
      %cst_125 = arith.constant 5.000000e-01 : f32
      %435 = vector.broadcast %cst_125 : f32 to vector<2x32xf32>
      %436 = arith.mulf %435, %434 : vector<2x32xf32>
      %cst_126 = arith.constant 5.000000e-01 : f32
      %437 = vector.broadcast %cst_126 : f32 to vector<2x32xf32>
      %438 = arith.addf %436, %437 : vector<2x32xf32>
      %439 = arith.mulf %428, %371 : vector<2x32xf32>
      %440 = arith.mulf %420, %430 : vector<2x32xf32>
      %441 = arith.addf %439, %440 : vector<2x32xf32>
      %442 = math.tanh %441 : vector<2x32xf32>
      %443 = arith.mulf %438, %442 : vector<2x32xf32>
      %444 = vector.extract_strided_slice %410 {offsets = [0, 128], sizes = [2, 128], strides = [1, 1]} : vector<2x256xf32> to vector<2x128xf32>
      %445 = vector.extract_strided_slice %24 {offsets = [12, 0], sizes = [2, 128], strides = [1, 1]} : vector<16x128xf32> to vector<2x128xf32>
      %446 = arith.addf %445, %444 : vector<2x128xf32>
      %447 = vector.extract_strided_slice %446 {offsets = [0, 0], sizes = [2, 32], strides = [1, 1]} : vector<2x128xf32> to vector<2x32xf32>
      %cst_127 = arith.constant 5.000000e-01 : f32
      %448 = vector.broadcast %cst_127 : f32 to vector<2x32xf32>
      %449 = arith.mulf %448, %447 : vector<2x32xf32>
      %450 = math.tanh %449 : vector<2x32xf32>
      %cst_128 = arith.constant 5.000000e-01 : f32
      %451 = vector.broadcast %cst_128 : f32 to vector<2x32xf32>
      %452 = arith.mulf %451, %450 : vector<2x32xf32>
      %cst_129 = arith.constant 5.000000e-01 : f32
      %453 = vector.broadcast %cst_129 : f32 to vector<2x32xf32>
      %454 = arith.addf %452, %453 : vector<2x32xf32>
      %455 = vector.extract_strided_slice %446 {offsets = [0, 32], sizes = [2, 32], strides = [1, 1]} : vector<2x128xf32> to vector<2x32xf32>
      %cst_130 = arith.constant 5.000000e-01 : f32
      %456 = vector.broadcast %cst_130 : f32 to vector<2x32xf32>
      %457 = arith.mulf %456, %455 : vector<2x32xf32>
      %458 = math.tanh %457 : vector<2x32xf32>
      %cst_131 = arith.constant 5.000000e-01 : f32
      %459 = vector.broadcast %cst_131 : f32 to vector<2x32xf32>
      %460 = arith.mulf %459, %458 : vector<2x32xf32>
      %cst_132 = arith.constant 5.000000e-01 : f32
      %461 = vector.broadcast %cst_132 : f32 to vector<2x32xf32>
      %462 = arith.addf %460, %461 : vector<2x32xf32>
      %463 = vector.extract_strided_slice %446 {offsets = [0, 64], sizes = [2, 32], strides = [1, 1]} : vector<2x128xf32> to vector<2x32xf32>
      %464 = math.tanh %463 : vector<2x32xf32>
      %465 = vector.extract_strided_slice %446 {offsets = [0, 96], sizes = [2, 32], strides = [1, 1]} : vector<2x128xf32> to vector<2x32xf32>
      %cst_133 = arith.constant 5.000000e-01 : f32
      %466 = vector.broadcast %cst_133 : f32 to vector<2x32xf32>
      %467 = arith.mulf %466, %465 : vector<2x32xf32>
      %468 = math.tanh %467 : vector<2x32xf32>
      %cst_134 = arith.constant 5.000000e-01 : f32
      %469 = vector.broadcast %cst_134 : f32 to vector<2x32xf32>
      %470 = arith.mulf %469, %468 : vector<2x32xf32>
      %cst_135 = arith.constant 5.000000e-01 : f32
      %471 = vector.broadcast %cst_135 : f32 to vector<2x32xf32>
      %472 = arith.addf %470, %471 : vector<2x32xf32>
      %473 = arith.mulf %462, %405 : vector<2x32xf32>
      %474 = arith.mulf %454, %464 : vector<2x32xf32>
      %475 = arith.addf %473, %474 : vector<2x32xf32>
      %476 = math.tanh %475 : vector<2x32xf32>
      %477 = arith.mulf %472, %476 : vector<2x32xf32>
      %478 = tpu.concatenate %477, %443 in 1 : vector<2x32xf32>, vector<2x32xf32> -> vector<2x64xf32>
      %479 = arith.truncf %478 : vector<2x64xf32> to vector<2x64xbf16>
      %cst_136 = arith.constant dense<0.000000e+00> : vector<2x256xf32>
      %480 = tpu.matmul %479, %3, %cst_136 {dimension_numbers = #tpu.dot_dimension_numbers<[1], [0], [0], [1], [0, 0, 1, 1], [], []>} : vector<2x64xbf16>, vector<64x256xbf16>, vector<2x256xf32> -> vector<2x256xf32>
      %481 = vector.extract_strided_slice %480 {offsets = [0, 0], sizes = [2, 128], strides = [1, 1]} : vector<2x256xf32> to vector<2x128xf32>
      %482 = arith.addf %481, %6 : vector<2x128xf32>
      %483 = vector.extract_strided_slice %482 {offsets = [0, 0], sizes = [2, 32], strides = [1, 1]} : vector<2x128xf32> to vector<2x32xf32>
      %cst_137 = arith.constant 5.000000e-01 : f32
      %484 = vector.broadcast %cst_137 : f32 to vector<2x32xf32>
      %485 = arith.mulf %484, %483 : vector<2x32xf32>
      %486 = math.tanh %485 : vector<2x32xf32>
      %cst_138 = arith.constant 5.000000e-01 : f32
      %487 = vector.broadcast %cst_138 : f32 to vector<2x32xf32>
      %488 = arith.mulf %487, %486 : vector<2x32xf32>
      %cst_139 = arith.constant 5.000000e-01 : f32
      %489 = vector.broadcast %cst_139 : f32 to vector<2x32xf32>
      %490 = arith.addf %488, %489 : vector<2x32xf32>
      %491 = vector.extract_strided_slice %482 {offsets = [0, 32], sizes = [2, 32], strides = [1, 1]} : vector<2x128xf32> to vector<2x32xf32>
      %cst_140 = arith.constant 5.000000e-01 : f32
      %492 = vector.broadcast %cst_140 : f32 to vector<2x32xf32>
      %493 = arith.mulf %492, %491 : vector<2x32xf32>
      %494 = math.tanh %493 : vector<2x32xf32>
      %cst_141 = arith.constant 5.000000e-01 : f32
      %495 = vector.broadcast %cst_141 : f32 to vector<2x32xf32>
      %496 = arith.mulf %495, %494 : vector<2x32xf32>
      %cst_142 = arith.constant 5.000000e-01 : f32
      %497 = vector.broadcast %cst_142 : f32 to vector<2x32xf32>
      %498 = arith.addf %496, %497 : vector<2x32xf32>
      %499 = vector.extract_strided_slice %482 {offsets = [0, 64], sizes = [2, 32], strides = [1, 1]} : vector<2x128xf32> to vector<2x32xf32>
      %500 = math.tanh %499 : vector<2x32xf32>
      %501 = vector.extract_strided_slice %482 {offsets = [0, 96], sizes = [2, 32], strides = [1, 1]} : vector<2x128xf32> to vector<2x32xf32>
      %cst_143 = arith.constant 5.000000e-01 : f32
      %502 = vector.broadcast %cst_143 : f32 to vector<2x32xf32>
      %503 = arith.mulf %502, %501 : vector<2x32xf32>
      %504 = math.tanh %503 : vector<2x32xf32>
      %cst_144 = arith.constant 5.000000e-01 : f32
      %505 = vector.broadcast %cst_144 : f32 to vector<2x32xf32>
      %506 = arith.mulf %505, %504 : vector<2x32xf32>
      %cst_145 = arith.constant 5.000000e-01 : f32
      %507 = vector.broadcast %cst_145 : f32 to vector<2x32xf32>
      %508 = arith.addf %506, %507 : vector<2x32xf32>
      %509 = arith.mulf %498, %441 : vector<2x32xf32>
      %510 = arith.mulf %490, %500 : vector<2x32xf32>
      %511 = arith.addf %509, %510 : vector<2x32xf32>
      %512 = math.tanh %511 : vector<2x32xf32>
      %513 = arith.mulf %508, %512 : vector<2x32xf32>
      %514 = vector.extract_strided_slice %480 {offsets = [0, 128], sizes = [2, 128], strides = [1, 1]} : vector<2x256xf32> to vector<2x128xf32>
      %515 = vector.extract_strided_slice %24 {offsets = [14, 0], sizes = [2, 128], strides = [1, 1]} : vector<16x128xf32> to vector<2x128xf32>
      %516 = arith.addf %515, %514 : vector<2x128xf32>
      %517 = vector.extract_strided_slice %516 {offsets = [0, 0], sizes = [2, 32], strides = [1, 1]} : vector<2x128xf32> to vector<2x32xf32>
      %cst_146 = arith.constant 5.000000e-01 : f32
      %518 = vector.broadcast %cst_146 : f32 to vector<2x32xf32>
      %519 = arith.mulf %518, %517 : vector<2x32xf32>
      %520 = math.tanh %519 : vector<2x32xf32>
      %cst_147 = arith.constant 5.000000e-01 : f32
      %521 = vector.broadcast %cst_147 : f32 to vector<2x32xf32>
      %522 = arith.mulf %521, %520 : vector<2x32xf32>
      %cst_148 = arith.constant 5.000000e-01 : f32
      %523 = vector.broadcast %cst_148 : f32 to vector<2x32xf32>
      %524 = arith.addf %522, %523 : vector<2x32xf32>
      %525 = vector.extract_strided_slice %516 {offsets = [0, 32], sizes = [2, 32], strides = [1, 1]} : vector<2x128xf32> to vector<2x32xf32>
      %cst_149 = arith.constant 5.000000e-01 : f32
      %526 = vector.broadcast %cst_149 : f32 to vector<2x32xf32>
      %527 = arith.mulf %526, %525 : vector<2x32xf32>
      %528 = math.tanh %527 : vector<2x32xf32>
      %cst_150 = arith.constant 5.000000e-01 : f32
      %529 = vector.broadcast %cst_150 : f32 to vector<2x32xf32>
      %530 = arith.mulf %529, %528 : vector<2x32xf32>
      %cst_151 = arith.constant 5.000000e-01 : f32
      %531 = vector.broadcast %cst_151 : f32 to vector<2x32xf32>
      %532 = arith.addf %530, %531 : vector<2x32xf32>
      %533 = vector.extract_strided_slice %516 {offsets = [0, 64], sizes = [2, 32], strides = [1, 1]} : vector<2x128xf32> to vector<2x32xf32>
      %534 = math.tanh %533 : vector<2x32xf32>
      %535 = vector.extract_strided_slice %516 {offsets = [0, 96], sizes = [2, 32], strides = [1, 1]} : vector<2x128xf32> to vector<2x32xf32>
      %cst_152 = arith.constant 5.000000e-01 : f32
      %536 = vector.broadcast %cst_152 : f32 to vector<2x32xf32>
      %537 = arith.mulf %536, %535 : vector<2x32xf32>
      %538 = math.tanh %537 : vector<2x32xf32>
      %cst_153 = arith.constant 5.000000e-01 : f32
      %539 = vector.broadcast %cst_153 : f32 to vector<2x32xf32>
      %540 = arith.mulf %539, %538 : vector<2x32xf32>
      %cst_154 = arith.constant 5.000000e-01 : f32
      %541 = vector.broadcast %cst_154 : f32 to vector<2x32xf32>
      %542 = arith.addf %540, %541 : vector<2x32xf32>
      %543 = arith.mulf %532, %475 : vector<2x32xf32>
      %544 = arith.mulf %524, %534 : vector<2x32xf32>
      %545 = arith.addf %543, %544 : vector<2x32xf32>
      %546 = math.tanh %545 : vector<2x32xf32>
      %547 = arith.mulf %542, %546 : vector<2x32xf32>
      %548 = tpu.concatenate %547, %513 in 1 : vector<2x32xf32>, vector<2x32xf32> -> vector<2x64xf32>
      %549 = arith.truncf %548 : vector<2x64xf32> to vector<2x64xbf16>
      %cst_155 = arith.constant dense<0.000000e+00> : vector<2x256xf32>
      %550 = tpu.matmul %549, %3, %cst_155 {dimension_numbers = #tpu.dot_dimension_numbers<[1], [0], [0], [1], [0, 0, 1, 1], [], []>} : vector<2x64xbf16>, vector<64x256xbf16>, vector<2x256xf32> -> vector<2x256xf32>
      %551 = vector.extract_strided_slice %550 {offsets = [0, 0], sizes = [2, 128], strides = [1, 1]} : vector<2x256xf32> to vector<2x128xf32>
      %552 = arith.addf %551, %6 : vector<2x128xf32>
      %553 = vector.extract_strided_slice %552 {offsets = [0, 0], sizes = [2, 32], strides = [1, 1]} : vector<2x128xf32> to vector<2x32xf32>
      %cst_156 = arith.constant 5.000000e-01 : f32
      %554 = vector.broadcast %cst_156 : f32 to vector<2x32xf32>
      %555 = arith.mulf %554, %553 : vector<2x32xf32>
      %556 = math.tanh %555 : vector<2x32xf32>
      %cst_157 = arith.constant 5.000000e-01 : f32
      %557 = vector.broadcast %cst_157 : f32 to vector<2x32xf32>
      %558 = arith.mulf %557, %556 : vector<2x32xf32>
      %cst_158 = arith.constant 5.000000e-01 : f32
      %559 = vector.broadcast %cst_158 : f32 to vector<2x32xf32>
      %560 = arith.addf %558, %559 : vector<2x32xf32>
      %561 = vector.extract_strided_slice %552 {offsets = [0, 32], sizes = [2, 32], strides = [1, 1]} : vector<2x128xf32> to vector<2x32xf32>
      %cst_159 = arith.constant 5.000000e-01 : f32
      %562 = vector.broadcast %cst_159 : f32 to vector<2x32xf32>
      %563 = arith.mulf %562, %561 : vector<2x32xf32>
      %564 = math.tanh %563 : vector<2x32xf32>
      %cst_160 = arith.constant 5.000000e-01 : f32
      %565 = vector.broadcast %cst_160 : f32 to vector<2x32xf32>
      %566 = arith.mulf %565, %564 : vector<2x32xf32>
      %cst_161 = arith.constant 5.000000e-01 : f32
      %567 = vector.broadcast %cst_161 : f32 to vector<2x32xf32>
      %568 = arith.addf %566, %567 : vector<2x32xf32>
      %569 = vector.extract_strided_slice %552 {offsets = [0, 64], sizes = [2, 32], strides = [1, 1]} : vector<2x128xf32> to vector<2x32xf32>
      %570 = math.tanh %569 : vector<2x32xf32>
      %571 = vector.extract_strided_slice %552 {offsets = [0, 96], sizes = [2, 32], strides = [1, 1]} : vector<2x128xf32> to vector<2x32xf32>
      %cst_162 = arith.constant 5.000000e-01 : f32
      %572 = vector.broadcast %cst_162 : f32 to vector<2x32xf32>
      %573 = arith.mulf %572, %571 : vector<2x32xf32>
      %574 = math.tanh %573 : vector<2x32xf32>
      %cst_163 = arith.constant 5.000000e-01 : f32
      %575 = vector.broadcast %cst_163 : f32 to vector<2x32xf32>
      %576 = arith.mulf %575, %574 : vector<2x32xf32>
      %cst_164 = arith.constant 5.000000e-01 : f32
      %577 = vector.broadcast %cst_164 : f32 to vector<2x32xf32>
      %578 = arith.addf %576, %577 : vector<2x32xf32>
      %579 = arith.mulf %568, %511 : vector<2x32xf32>
      %580 = arith.mulf %560, %570 : vector<2x32xf32>
      %581 = arith.addf %579, %580 : vector<2x32xf32>
      %582 = math.tanh %581 : vector<2x32xf32>
      %583 = arith.mulf %578, %582 : vector<2x32xf32>
      %584 = vector.extract_strided_slice %550 {offsets = [0, 128], sizes = [2, 128], strides = [1, 1]} : vector<2x256xf32> to vector<2x128xf32>
      scf.yield %584, %545, %583, %581 : vector<2x128xf32>, vector<2x32xf32>, vector<2x32xf32>, vector<2x32xf32>
    }
    %c4_i32_7 = arith.constant 4 : i32
    %14 = tpu.concatenate %13#0, %13#1, %13#2, %13#3 in 1 : vector<2x128xf32>, vector<2x32xf32>, vector<2x32xf32>, vector<2x32xf32> -> vector<2x224xf32>
    %c0_8 = arith.constant 0 : index
    %c0_9 = arith.constant 0 : index
    %15 = vector.load %arg5[%c0_8, %c0_9] : memref<2x224xf32, #tpu.memory_space<vmem>>, vector<2x224xf32>
    tpu.vector_store %arg5[%c0_8, %c0_9], %14 {strides = array<i32>} : memref<2x224xf32, #tpu.memory_space<vmem>>, vector<2x224xf32>,
    %c1_i32_10 = arith.constant 1 : i32
    %16 = arith.cmpi eq, %arg0, %c1_i32_10 : i32
    %17 = arith.extui %16 : i1 to i32
    %c0_i32_11 = arith.constant 0 : i32
    %18 = arith.cmpi ne, %17, %c0_i32_11 : i32
    scf.if %18 {
      %c0_12 = arith.constant 0 : index
      %c0_13 = arith.constant 0 : index
      %19 = vector.load %arg4[%c0_12, %c0_13] : memref<2x32xf32, #tpu.memory_space<vmem>>, vector<2x32xf32>
      tpu.vector_store %arg4[%c0_12, %c0_13], %13#2 {strides = array<i32>} : memref<2x32xf32, #tpu.memory_space<vmem>>, vector<2x32xf32>,
    } else {
    }
    return
  }
  func.func @transform_0(%arg0: i32) -> (i32, i32, i32) {
    %c0_i32 = arith.constant 0 : i32
    %c0_i32_0 = arith.constant 0 : i32
    %c0_i32_1 = arith.constant 0 : i32
    return %arg0, %c0_i32, %c0_i32_0 : i32, i32, i32
  }
  func.func @transform_1(%arg0: i32) -> (i32, i32) {
    %c0_i32 = arith.constant 0 : i32
    %c0_i32_0 = arith.constant 0 : i32
    %c0_i32_1 = arith.constant 0 : i32
    return %c0_i32, %c0_i32_0 : i32, i32
  }
  func.func @transform_2(%arg0: i32) -> (i32, i32) {
    %c0_i32 = arith.constant 0 : i32
    %c0_i32_0 = arith.constant 0 : i32
    %c0_i32_1 = arith.constant 0 : i32
    return %c0_i32, %c0_i32_0 : i32, i32
  }
  func.func @transform_3(%arg0: i32) -> (i32, i32) {
    %c0_i32 = arith.constant 0 : i32
    %c0_i32_0 = arith.constant 0 : i32
    %c0_i32_1 = arith.constant 0 : i32
    return %c0_i32, %c0_i32_0 : i32, i32
  }
}

</mosaic_0001>

<bundles_post_ra>
// kernel: sequence_model_forward.1
= control target key start
LH: loop header
LB: loop body
LE: loop exit
PB: predicated region body
PF: predicated region fallthrough
CT: control target
= control target key end

     0   :  { %s1390_s12 = smov 0   ;;  %s1759_s0 = inlined_call_operand.vmem [shape: bf16[2,64,128], index: 0, kind: input, shape index: {}]   ;;  %s1760_s1 = inlined_call_operand.vmem [shape: bf16[64,256], index: 1, kind: input, shape index: {}]   ;;  %s1761_s2 = inlined_call_operand.vmem [shape: f32[1,128], index: 2, kind: input, shape index: {}]   ;;  %s1762_s3 = inlined_call_operand.vmem [shape: f32[2,32], index: 3, kind: output, shape index: {}]  }
   0x1 LB: > { %s1396_s13 = sadd.s32 4294967295, %s1341_s12   ;;  %p1088_p0 = scmp.ge.s32.totalorder %s1341_s12, 1  ;;  %s1341_s12 = sphi %s1390_s12, %s13_s12  }
   0x2   : > { %p132_p1 = scmp.lt.s32.totalorder %s1341_s12, 3 }
   0x4   : > { %p133_p2 = pnand %p1088_p0, %p132_p1 }
   0x5   : > { %p151_p3 = scmp.lt.s32.totalorder (!%p133_p2), %s1396_s13, 1  ;;  %p1091_p4 = scmp.ne.s32.totalorder (!%p133_p2), %s1396_s13, 0 }
   0x6   : > { %136 = sbr.rel (%p133_p2) target bundleno = 5510 (0x1586), region = 32 }
   0xb   : > { %s152_s14 = scalar_select %p151_p3, %s1396_s13, 1 }
   0xc   : > { %160 = sbr.rel (%p1091_p4) target bundleno = 20 (0x14), region = 36 }
   0xd   : > { %s1145_s15 = sshll.u32 %s152_s14, 5 }
   0xe   : > { %s1405_s18 = scalar_lea.vmem %s1759_s0, %s1145_s15 }
  0x11   : > { %vm161_vm0 = vcmask 1041408   ;;  %vm162_vm1 = vcmask 781314   ;;  %v1363_v0 = vmov 0.0  }
  0x12   : > { %vm163_vm2 = vmor %vm162_vm1, %vm161_vm0 }
  0x13   : > { %164 = vst.msk [vmem:[#allocation2] sm:$0xf] %vm163_vm2, %v1363_v0 }
  0x14 PF: > { %s1364_s19 = smov 96   ;;  %s1365_s20 = smov 64   ;;  %v1412_v5 = vld [vmem:[%s1760_s1 + $0x4] sm:$0xf]  ;;  %v1417_v6 = vld [vmem:[%s1760_s1] sm:$0xf] }
  0x15   : > { %v1422_v7 = vld [vmem:[%s1760_s1 + $0x8] sm:$0xf0]  ;;  %v1427_v8 = vld [vmem:[%s1760_s1 + $0x4] sm:$0xf0]  ;;  %v1432_v9 = vld [vmem:[%s1760_s1 + $0x14] sm:$0xf] }
  0x16   : > { %v1437_v10 = vld [vmem:[%s1760_s1 + $0x10] sm:$0xf]  ;;  %v1442_v11 = vld [vmem:[%s1760_s1 + $0x18] sm:$0xf0]  ;;  %v1447_v12 = vld [vmem:[%s1760_s1 + $0x14] sm:$0xf0] }
  0x17   : > { %v1452_v13 = vld [vmem:[%s1760_s1 + $0x24] sm:$0xf]  ;;  %v1457_v14 = vld [vmem:[%s1760_s1 + $0x20] sm:$0xf]  ;;  %v1462_v15 = vld [vmem:[%s1760_s1 + $0x28] sm:$0xf0] }
  0x18   : > { %v1467_v16 = vld [vmem:[%s1760_s1 + $0x24] sm:$0xf0]  ;;  %v1472_v17 = vld [vmem:[%s1760_s1 + $0x34] sm:$0xf]  ;;  %v1477_v18 = vld [vmem:[%s1760_s1 + $0x30] sm:$0xf] }
  0x19   : > { %v1482_v19 = vld [vmem:[%s1760_s1 + $0x38] sm:$0xf0]  ;;  %v1487_v20 = vld [vmem:[%s1760_s1 + $0x34] sm:$0xf0]  ;;  %v1492_v21 = vld [vmem:[%s1761_s2] ss:$0 sm:$0xff] }
  0x1a   : > { %v177_v1 = vld [vmem:[#allocation2] sm:$0xf]   ;;  %s1502_s5 = smov 0  }
  0x1b   : > { %179 = vst [vmem:[#allocation1] ss:$4 sm:$0xff] %v177_v1 }
  0x22   : > { %v180_v2 = vld.sshfl [vmem:[#allocation1 + $0x8] sm:$0xff pattern:$0x73625140]  }
  0x23   : > { %182 = vst [vmem:[#allocation1] ss:$4 sm:$0xff] %v177_v1 }
  0x2a   : > { %v183_v3 = vld.sshfl [vmem:[#allocation1 + $0x8] sm:$0xff pattern:$0x73625140] }
  0x2b   : > { %184 = vrot.lane.b32.xlu0 %v183_v3, %s1364_s19  ;;  %187 = vst [vmem:[#allocation1] ss:$4 sm:$0xff] %v177_v1 }
  0x32   : > { %v188_v4 = vld.sshfl [vmem:[#allocation1 + $0x8] sm:$0xff pattern:$0x73625140] }
  0x33   : > { %189 = vrot.lane.b32.xlu0 %v188_v4, %s1365_s20 }
  0x9d   : > { %v185_v22 = vpop.permute.xlu0 %184  }
  0xa5   : > { %v190_v23 = vpop.permute.xlu0 %189  }
  0xa6 LB: >> { %s1092_s6 = sshll.u32 %s1361_s5, 4  ;;  %s1366_s10 = smov 64   ;;  %v1530_v39 = vor.u32 %v1487_v20, %v1477_v18  ;;  %v1534_v40 = vor.u32 %v1472_v17, %v1482_v19  ;;  %v1540_v41 = vor.u32 %v1467_v16, %v1457_v14  ;;  %v1544_v42 = vor.u32 %v1452_v13, %v1462_v15  ;;  %s1361_s5 = sphi %s1502_s5, %s197_s5   ;;  %v1357_v1 = vphi %v177_v1, %v1766_v1   ;;  %v1353_v2 = vphi %v180_v2, %v1765_v2   ;;  %v1349_v22 = vphi %v185_v22, %v1764_v22   ;;  %v1345_v23 = vphi %v190_v23, %v1763_v23  }
  0xa7   : >> { %s203_s7 = sshra.s32 %s1092_s6, 3  ;;  %s1367_s11 = smov 32   ;;  %v1552_v43 = vor.u32 %v1447_v12, %v1437_v10  ;;  %v1556_v44 = vor.u32 %v1432_v9, %v1442_v11  ;;  %v1567_v48 = vor.u32 %v1427_v8, %v1417_v6  ;;  %v1571_v49 = vor.u32 %v1412_v5, %v1422_v7 }
  0xa8   : >> { %s1093_s8 = sshll.u32 %s203_s7, 2  ;;  %297 = vmatpush.bf16.msra.mxu0 %v1530_v39  ;;  %310 = vmatpush.bf16.msra.mxu1 %v1534_v40  ;;  %vm246_vm3 = vcmask 261120   ;;  %vm289_vm4 = vcmask 523264   ;;  %s1368_s14 = smov 96  }
  0xa9   : >> { %s206_s9 = scalar_lea.vmem %s1405_s18, %s1093_s8  ;;  %395 = vmatpush.bf16.msra.mxu2 %v1530_v39  ;;  %408 = vmatpush.bf16.msra.mxu3 %v1534_v40  ;;  %s197_s5 = sadd.s32 1, %s1361_s5  }
  0xaa   : >> { %v1515_v24 = vld [vmem:[%s206_s9] sm:$0xff]   ;;  %p194_p5 = scmp.ge.s32.totalorder %s197_s5, 4  }
  0xab   : >> { %v1518_v25 = vunpack.c.l.bf16 %v1515_v24  ;;  %s1369_s15 = smov (%p194_p5), 32   ;;  %vm1026_vm5 = vcmask (%p194_p5), 1041408   ;;  %vm1029_vm6 = vcmask (%p194_p5), 781314   ;;  %p1142_p6 = scmp.ne.s32.totalorder (%p194_p5), %s1396_s13, 1 }
  0xac   : >> { %298 = vmatpush.bf16.msra.mxu0 %v1540_v41  ;;  %311 = vmatpush.bf16.msra.mxu1 %v1544_v42  ;;  %vm1030_vm7 = vmor (%p194_p5), %vm1029_vm6, %vm1026_vm5 }
  0xad   : >> { %v211_v26 = vadd.f32 %v1357_v1, %v1518_v25  ;;  %396 = vmatpush.bf16.msra.mxu2 %v1540_v41  ;;  %409 = vmatpush.bf16.msra.mxu3 %v1544_v42 }
  0xaf   : >> { %1219 = vtanh.f32 %v211_v26  ;;  %v212_v28 = vmul.f32 0.5, %v211_v26 }
  0xb0   : >> { %299 = vmatpush.bf16.msra.mxu0 %v1552_v43  ;;  %312 = vmatpush.bf16.msra.mxu1 %v1556_v44 }
  0xb1   : >> { %1221 = vtanh.f32 %v212_v28  ;;  %397 = vmatpush.bf16.msra.mxu2 %v1552_v43  ;;  %410 = vmatpush.bf16.msra.mxu3 %v1556_v44 }
  0xb4   : >> { %300 = vmatpush.bf16.msra.mxu0 %v1567_v48  ;;  %313 = vmatpush.bf16.msra.mxu1 %v1571_v49 }
  0xb5   : >> { %v1220_v27 = vpop.eup %1219  ;;  %398 = vmatpush.bf16.msra.mxu2 %v1567_v48  ;;  %411 = vmatpush.bf16.msra.mxu3 %v1571_v49 }
  0xb6   : >> { %223 = vrot.lane.b32.xlu0 %v1220_v27, %s1366_s10 }
  0xb7   : >> { %v1222_v29 = vpop.eup %1221 }
  0xb8   : >> { %v214_v30 = vmul.f32 0.5, %v1222_v29  ;;  %502 = vmatpush.bf16.msrb.mxu1 %v1534_v40  ;;  %489 = vmatpush.bf16.msrb.mxu0 %v1530_v39 }
  0xb9   : >> { %583 = vmatpush.bf16.msrb.mxu2 %v1530_v39  ;;  %596 = vmatpush.bf16.msrb.mxu3 %v1534_v40 }
  0xba   : >> { %v215_v31 = vadd.f32 0.5, %v214_v30 }
  0xbc   : >> { %503 = vmatpush.bf16.msrb.mxu1 %v1544_v42  ;;  %490 = vmatpush.bf16.msrb.mxu0 %v1540_v41 }
  0xbd   : >> { %584 = vmatpush.bf16.msrb.mxu2 %v1540_v41  ;;  %597 = vmatpush.bf16.msrb.mxu3 %v1544_v42 }
  0xbe   : >> { %218 = vrot.lane.b32.xlu0 %v1353_v2, %s1367_s11 }
  0xc0   : >> { %504 = vmatpush.bf16.msrb.mxu1 %v1556_v44  ;;  %491 = vmatpush.bf16.msrb.mxu0 %v1552_v43 }
  0xc1   : >> { %585 = vmatpush.bf16.msrb.mxu2 %v1552_v43  ;;  %598 = vmatpush.bf16.msrb.mxu3 %v1556_v44 }
  0xc4   : >> { %505 = vmatpush.bf16.msrb.mxu1 %v1571_v49  ;;  %492 = vmatpush.bf16.msrb.mxu0 %v1567_v48 }
  0xc5   : >> { %586 = vmatpush.bf16.msrb.mxu2 %v1567_v48  ;;  %599 = vmatpush.bf16.msrb.mxu3 %v1571_v49 }
 0x128   : >> { %v224_v32 = vpop.permute.xlu0 %223 }
 0x129   : >> { %v226_v33 = vmul.f32 %v224_v32, %v215_v31 }
 0x12b   : >> { %228 = vrot.lane.b32.xlu1 %v226_v33, %s1367_s11 }
 0x130   : >> { %v219_v34 = vpop.permute.xlu0 %218 }
 0x131   : >> { %v221_v35 = vmul.f32 %v219_v34, %v215_v31 }
 0x19d   : >> { %v229_v36 = vpop.permute.xlu1 %228 }
 0x19e   : >> { %v1524_v37 = vadd.f32 %v229_v36, %v221_v35 }
 0x1a0   : >> { %1223 = vtanh.f32 %v1524_v37  ;;  %v356_v36 = vrot.slane %v1524_v37, 6 }
 0x1a6   : >> { %v1224_v38 = vpop.eup %1223 }
 0x1a7   : >> { %234 = vrot.lane.b32.xlu1 %v1224_v38, %s1366_s10 }
 0x1af   : >> { %326 = vrot.lane.b32.xlu1 %v1345_v23, %s1367_s11 }
 0x219   : >> { %v235_v45 = vpop.permute.xlu1 %234 }
 0x21a   : >> { %v237_v46 = vmul.f32 %v235_v45, %v215_v31 }
 0x21c   : >> { %v1214_v47 = vpack.i.bf16 %v1349_v22, %v237_v46 }
 0x21e   : >> { %1215 = vrot.lane.b32.xlu2 %v1214_v47, %s1367_s11 }
 0x221   : >> { %v327_v31 = vpop.permute.xlu1 %326 }
 0x278   : >> { %v1216_v50 = vpop.permute.xlu2 %1215 }
 0x279   : >> { %v1218_v51 = vunpack.i.h.bf16 %v1216_v50  ;;  %v1217_v52 = vunpack.i.l.bf16 %v1216_v50 }
 0x27b   : >> { %v247_v53 = vsel %vm246_vm3, %v1217_v52, %v1218_v51 }
 0x27c   : >> { %v248_v54 = vpack.c.bf16 %v247_v53, %v247_v53 }
 0x27e   : >> { %1126 = vmatmul.msk.bf16.vlgmr.msra.gmra.mxu0 %vm289_vm4, %v248_v54  ;;  %1127 = vmatmul.msk.bf16.vlgmr.msra.gmra.mxu1 %vm289_vm4, %v248_v54 }
 0x27f   : >> { %671 = vmatpush.bf16.msra.mxu0 %v1530_v39  ;;  %684 = vmatpush.bf16.msra.mxu1 %v1534_v40 }
 0x283   : >> { %672 = vmatpush.bf16.msra.mxu0 %v1540_v41  ;;  %685 = vmatpush.bf16.msra.mxu1 %v1544_v42 }
 0x287   : >> { %673 = vmatpush.bf16.msra.mxu0 %v1552_v43  ;;  %686 = vmatpush.bf16.msra.mxu1 %v1556_v44 }
 0x28b   : >> { %674 = vmatpush.bf16.msra.mxu0 %v1567_v48  ;;  %687 = vmatpush.bf16.msra.mxu1 %v1571_v49 }
 0x2fb   : >> { %v302_v55 = vpop.f32.mrf.mxu0  ;;  %v315_v56 = vpop.f32.mrf.mxu1 }
 0x2fc   : >> { %v319_v57 = vadd.f32 %v1492_v21, %v302_v55  ;;  %v347_v58 = vrot.slane %v315_v56, 6 }
 0x2fe   : >> { %1225 = vtanh.f32 %v319_v57  ;;  %v349_v59 = vadd.f32 %v1518_v25, %v347_v58  ;;  %v320_v0 = vmul.f32 0.5, %v319_v57 }
 0x300   : >> { %1227 = vtanh.f32 %v349_v59  ;;  %v350_v23 = vmul.f32 0.5, %v349_v59 }
 0x301   : >> { %1229 = vtanh.f32 %v320_v0 }
 0x302   : >> { %1231 = vtanh.f32 %v350_v23 }
 0x303   : >> { %v304_v60 = vpop.f32.mrf.mxu0  ;;  %v317_v61 = vpop.f32.mrf.mxu1 }
 0x304   : >> { %v1226_v62 = vpop.eup %1225 }
 0x305   : >> { %331 = vrot.lane.b32.xlu2 %v1226_v62, %s1366_s10 }
 0x306   : >> { %v1228_v63 = vpop.eup %1227 }
 0x307   : >> { %360 = vrot.lane.b32.xlu0 %v1228_v63, %s1366_s10  ;;  %v1230_v1 = vpop.eup %1229 }
 0x308   : >> { %v322_v2 = vmul.f32 0.5, %v1230_v1  ;;  %v1232_v26 = vpop.eup %1231 }
 0x309   : >> { %v352_v27 = vmul.f32 0.5, %v1232_v26 }
 0x30a   : >> { %v323_v3 = vadd.f32 0.5, %v322_v2 }
 0x30b   : >> { %v353_v28 = vadd.f32 0.5, %v352_v27 }
 0x30c   : >> { %v329_v32 = vmul.f32 %v327_v31, %v323_v3 }
 0x30d   : >> { %v358_v38 = vmul.f32 %v356_v36, %v353_v28 }
 0x35f   : >> { %v332_v4 = vpop.permute.xlu2 %331 }
 0x360   : >> { %v334_v22 = vmul.f32 %v332_v4, %v323_v3 }
 0x362   : >> { %336 = vrot.lane.b32.xlu2 %v334_v22, %s1367_s11 }
 0x379   : >> { %v361_v29 = vpop.permute.xlu0 %360 }
 0x37a   : >> { %v363_v30 = vmul.f32 %v361_v29, %v353_v28 }
 0x37c   : >> { %365 = vrot.lane.b32.xlu0 %v363_v30, %s1367_s11 }
 0x3bc   : >> { %v337_v33 = vpop.permute.xlu2 %336 }
 0x3bd   : >> { %v339_v34 = vadd.f32 %v337_v33, %v329_v32 }
 0x3bf   : >> { %1233 = vtanh.f32 %v339_v34 }
 0x3c5   : >> { %v1234_v35 = vpop.eup %1233 }
 0x3c6   : >> { %342 = vrot.lane.b32.xlu1 %v1234_v35, %s1366_s10 }
 0x3ee   : >> { %v366_v45 = vpop.permute.xlu0 %365 }
 0x3ef   : >> { %v368_v46 = vadd.f32 %v366_v45, %v358_v38 }
 0x3f1   : >> { %1235 = vtanh.f32 %v368_v46  ;;  %v450_v38 = vrot.slane %v368_v46, 6 }
 0x3f7   : >> { %v1236_v47 = vpop.eup %1235 }
 0x3f8   : >> { %371 = vrot.lane.b32.xlu2 %v1236_v47, %s1366_s10 }
 0x438   : >> { %v343_v50 = vpop.permute.xlu1 %342 }
 0x439   : >> { %v345_v51 = vmul.f32 %v343_v50, %v323_v3 }
 0x43b   : >> { %v380_v52 = vrot.slane %v345_v51, 6 }
 0x43d   : >> { %381 = vrot.lane.b32.xlu1 %v380_v52, %s1366_s10 }
 0x452   : >> { %v372_v53 = vpop.permute.xlu2 %371 }
 0x453   : >> { %v374_v54 = vmul.f32 %v372_v53, %v353_v28 }
 0x455   : >> { %376 = vrot.lane.b32.xlu0 %v374_v54, %s1367_s11 }
 0x4af   : >> { %v382_v55 = vpop.permute.xlu1 %381 }
 0x4c7   : >> { %v377_v56 = vpop.permute.xlu0 %376 }
 0x4c8   : >> { %v384_v37 = vsel %vm246_vm3, %v377_v56, %v382_v55 }
 0x4c9   : >> { %v385_v57 = vpack.c.bf16 %v384_v37, %v384_v37 }
 0x4cb   : >> { %v387_v58 = vrot.slane %v385_v57, 1 }
 0x4cd   : >> { %1128 = vmatmul.msk.bf16.vlgmr.msra.gmra.mxu2 %vm289_vm4, %v387_v58  ;;  %1129 = vmatmul.msk.bf16.vlgmr.msra.gmra.mxu3 %vm289_vm4, %v387_v58 }
 0x4ce   : >> { %778 = vmatpush.bf16.msra.mxu3 %v1534_v40  ;;  %765 = vmatpush.bf16.msra.mxu2 %v1530_v39 }
 0x4d2   : >> { %779 = vmatpush.bf16.msra.mxu3 %v1544_v42  ;;  %766 = vmatpush.bf16.msra.mxu2 %v1540_v41 }
 0x4d6   : >> { %780 = vmatpush.bf16.msra.mxu3 %v1556_v44  ;;  %767 = vmatpush.bf16.msra.mxu2 %v1552_v43 }
 0x4da   : >> { %781 = vmatpush.bf16.msra.mxu3 %v1571_v49  ;;  %768 = vmatpush.bf16.msra.mxu2 %v1567_v48 }
 0x550   : >> { %v400_v59 = vpop.f32.mrf.mxu2  ;;  %v413_v60 = vpop.f32.mrf.mxu3 }
 0x551   : >> { %v417_v61 = vadd.f32 %v1492_v21, %v400_v59  ;;  %v441_v62 = vrot.slane %v413_v60, 4 }
 0x553   : >> { %1237 = vtanh.f32 %v417_v61  ;;  %v443_v63 = vadd.f32 %v1518_v25, %v441_v62  ;;  %v418_v4 = vmul.f32 0.5, %v417_v61 }
 0x555   : >> { %1239 = vtanh.f32 %v443_v63  ;;  %v444_v29 = vmul.f32 0.5, %v443_v63 }
 0x556   : >> { %1241 = vtanh.f32 %v418_v4 }
 0x557   : >> { %1243 = vtanh.f32 %v444_v29 }
 0x558   : >> { %v402_v0 = vpop.f32.mrf.mxu2  ;;  %v415_v1 = vpop.f32.mrf.mxu3 }
 0x559   : >> { %v1238_v2 = vpop.eup %1237 }
 0x55a   : >> { %425 = vrot.lane.b32.xlu2 %v1238_v2, %s1366_s10 }
 0x55b   : >> { %v1240_v3 = vpop.eup %1239 }
 0x55c   : >> { %454 = vrot.lane.b32.xlu0 %v1240_v3, %s1366_s10  ;;  %v1242_v22 = vpop.eup %1241 }
 0x55d   : >> { %v420_v23 = vmul.f32 0.5, %v1242_v22  ;;  %v1244_v30 = vpop.eup %1243 }
 0x55e   : >> { %v446_v31 = vmul.f32 0.5, %v1244_v30 }
 0x55f   : >> { %v421_v26 = vadd.f32 0.5, %v420_v23 }
 0x560   : >> { %v447_v32 = vadd.f32 0.5, %v446_v31 }
 0x561   : >> { %v423_v36 = vmul.f32 %v421_v26, %v339_v34 }
 0x562   : >> { %v452_v50 = vmul.f32 %v450_v38, %v447_v32 }
 0x5b4   : >> { %v426_v27 = vpop.permute.xlu2 %425 }
 0x5b5   : >> { %v428_v28 = vmul.f32 %v426_v27, %v421_v26 }
 0x5b7   : >> { %430 = vrot.lane.b32.xlu1 %v428_v28, %s1367_s11 }
 0x5ce   : >> { %v455_v33 = vpop.permute.xlu0 %454 }
 0x5cf   : >> { %v457_v35 = vmul.f32 %v455_v33, %v447_v32 }
 0x5d1   : >> { %459 = vrot.lane.b32.xlu2 %v457_v35, %s1367_s11 }
 0x629   : >> { %v431_v45 = vpop.permute.xlu1 %430 }
 0x62a   : >> { %v1634_v47 = vadd.f32 %v431_v45, %v423_v36 }
 0x62b   : >> { %v460_v51 = vpop.permute.xlu2 %459 }
 0x62c   : >> { %1245 = vtanh.f32 %v1634_v47  ;;  %v462_v52 = vadd.f32 %v460_v51, %v452_v50 }
 0x62e   : >> { %1247 = vtanh.f32 %v462_v52  ;;  %v544_v45 = vrot.slane %v462_v52, 6 }
 0x632   : >> { %v1246_v53 = vpop.eup %1245 }
 0x633   : >> { %436 = vrot.lane.b32.xlu0 %v1246_v53, %s1366_s10 }
 0x634   : >> { %v1248_v54 = vpop.eup %1247 }
 0x635   : >> { %465 = vrot.lane.b32.xlu1 %v1248_v54, %s1366_s10 }
 0x6a5   : >> { %v437_v55 = vpop.permute.xlu0 %436 }
 0x6a6   : >> { %v439_v56 = vmul.f32 %v437_v55, %v421_v26 }
 0x6a7   : >> { %v466_v34 = vpop.permute.xlu1 %465 }
 0x6a8   : >> { %v474_v37 = vrot.slane %v439_v56, 4  ;;  %v468_v46 = vmul.f32 %v466_v34, %v447_v32 }
 0x6aa   : >> { %475 = vrot.lane.b32.xlu0 %v474_v37, %s1366_s10  ;;  %470 = vrot.lane.b32.xlu2 %v468_v46, %s1367_s11 }
 0x704   : >> { %v471_v57 = vpop.permute.xlu2 %470 }
 0x71c   : >> { %v476_v58 = vpop.permute.xlu0 %475 }
 0x71d   : >> { %v478_v59 = vsel %vm246_vm3, %v471_v57, %v476_v58 }
 0x71e   : >> { %v479_v60 = vpack.c.bf16 %v478_v59, %v478_v59 }
 0x720   : >> { %v481_v61 = vrot.slane %v479_v60, 2 }
 0x722   : >> { %1130 = vmatmul.msk.bf16.vlgmr.msrb.gmra.mxu0 %vm289_vm4, %v481_v61  ;;  %1131 = vmatmul.msk.bf16.vlgmr.msrb.gmra.mxu1 %vm289_vm4, %v481_v61 }
 0x723   : >> { %859 = vmatpush.bf16.msrb.mxu0 %v1530_v39  ;;  %872 = vmatpush.bf16.msrb.mxu1 %v1534_v40 }
 0x727   : >> { %860 = vmatpush.bf16.msrb.mxu0 %v1540_v41  ;;  %873 = vmatpush.bf16.msrb.mxu1 %v1544_v42 }
 0x72b   : >> { %861 = vmatpush.bf16.msrb.mxu0 %v1552_v43  ;;  %874 = vmatpush.bf16.msrb.mxu1 %v1556_v44 }
 0x72f   : >> { %862 = vmatpush.bf16.msrb.mxu0 %v1567_v48  ;;  %875 = vmatpush.bf16.msrb.mxu1 %v1571_v49 }
 0x79f   : >> { %v494_v62 = vpop.f32.mrf.mxu0  ;;  %v507_v63 = vpop.f32.mrf.mxu1 }
 0x7a0   : >> { %v511_v0 = vadd.f32 %v1492_v21, %v494_v62  ;;  %v535_v1 = vrot.slane %v507_v63, 2 }
 0x7a2   : >> { %1249 = vtanh.f32 %v511_v0  ;;  %v537_v2 = vadd.f32 %v1518_v25, %v535_v1  ;;  %v512_v32 = vmul.f32 0.5, %v511_v0  ;;  %v1678_v0 = vunpack.c.h.bf16 %v1515_v24 }
 0x7a4   : >> { %1251 = vtanh.f32 %v537_v2  ;;  %v538_v26 = vmul.f32 0.5, %v537_v2 }
 0x7a6   : >> { %1253 = vtanh.f32 %v538_v26 }
 0x7a7   : >> { %v496_v3 = vpop.f32.mrf.mxu0  ;;  %v509_v4 = vpop.f32.mrf.mxu1  ;;  %1255 = vtanh.f32 %v512_v32 }
 0x7a8   : >> { %v1250_v22 = vpop.eup %1249 }
 0x7a9   : >> { %519 = vrot.lane.b32.xlu1 %v1250_v22, %s1366_s10 }
 0x7aa   : >> { %v1252_v23 = vpop.eup %1251 }
 0x7ab   : >> { %548 = vrot.lane.b32.xlu2 %v1252_v23, %s1366_s10 }
 0x7ac   : >> { %v1254_v27 = vpop.eup %1253 }
 0x7ad   : >> { %v540_v28 = vmul.f32 0.5, %v1254_v27  ;;  %v1256_v25 = vpop.eup %1255 }
 0x7ae   : >> { %v514_v33 = vmul.f32 0.5, %v1256_v25 }
 0x7af   : >> { %v541_v29 = vadd.f32 0.5, %v540_v28 }
 0x7b0   : >> { %v515_v35 = vadd.f32 0.5, %v514_v33 }
 0x7b1   : >> { %v546_v50 = vmul.f32 %v544_v45, %v541_v29 }
 0x7b2   : >> { %v517_v55 = vmul.f32 %v515_v35, %v1634_v47 }
 0x805   : >> { %v549_v30 = vpop.permute.xlu2 %548 }
 0x806   : >> { %v551_v31 = vmul.f32 %v549_v30, %v541_v29 }
 0x808   : >> { %553 = vrot.lane.b32.xlu1 %v551_v31, %s1367_s11 }
 0x81b   : >> { %v520_v36 = vpop.permute.xlu1 %519 }
 0x81c   : >> { %v522_v38 = vmul.f32 %v520_v36, %v515_v35 }
 0x81e   : >> { %524 = vrot.lane.b32.xlu0 %v522_v38, %s1367_s11 }
 0x87a   : >> { %v554_v51 = vpop.permute.xlu1 %553 }
 0x87b   : >> { %v1658_v53 = vadd.f32 %v554_v51, %v546_v50 }
 0x87d   : >> { %1257 = vtanh.f32 %v1658_v53 }
 0x883   : >> { %v1258_v54 = vpop.eup %1257 }
 0x884   : >> { %559 = vrot.lane.b32.xlu0 %v1258_v54, %s1366_s10 }
 0x890   : >> { %v525_v56 = vpop.permute.xlu0 %524 }
 0x891   : >> { %v527_v37 = vadd.f32 %v525_v56, %v517_v55 }
 0x893   : >> { %1259 = vtanh.f32 %v527_v37 }
 0x899   : >> { %v1260_v34 = vpop.eup %1259 }
 0x89a   : >> { %530 = vrot.lane.b32.xlu2 %v1260_v34, %s1366_s10 }
 0x8f4   : >> { %v531_v46 = vpop.permute.xlu2 %530 }
 0x8f5   : >> { %v533_v57 = vmul.f32 %v531_v46, %v515_v35  ;;  %v635_v35 = vrot.slane %v1658_v53, 6 }
 0x8f6   : >> { %v560_v58 = vpop.permute.xlu0 %559 }
 0x8f7   : >> { %v568_v52 = vrot.slane %v533_v57, 2  ;;  %v562_v59 = vmul.f32 %v560_v58, %v541_v29 }
 0x8f9   : >> { %569 = vrot.lane.b32.xlu2 %v568_v52, %s1366_s10  ;;  %564 = vrot.lane.b32.xlu1 %v562_v59, %s1367_s11 }
 0x953   : >> { %v570_v60 = vpop.permute.xlu2 %569 }
 0x96b   : >> { %v565_v61 = vpop.permute.xlu1 %564 }
 0x96c   : >> { %v572_v62 = vsel %vm246_vm3, %v565_v61, %v570_v60 }
 0x96d   : >> { %v573_v47 = vpack.c.bf16 %v572_v62, %v572_v62 }
 0x96f   : >> { %v575_v63 = vrot.slane %v573_v47, 3 }
 0x971   : >> { %1132 = vmatmul.msk.bf16.vlgmr.msrb.gmra.mxu2 %vm289_vm4, %v575_v63  ;;  %1133 = vmatmul.msk.bf16.vlgmr.msrb.gmra.mxu3 %vm289_vm4, %v575_v63 }
 0x972   : >> { %953 = vmatpush.bf16.msrb.mxu2 %v1530_v39  ;;  %966 = vmatpush.bf16.msrb.mxu3 %v1534_v40 }
 0x976   : >> { %954 = vmatpush.bf16.msrb.mxu2 %v1540_v41  ;;  %967 = vmatpush.bf16.msrb.mxu3 %v1544_v42 }
 0x97a   : >> { %955 = vmatpush.bf16.msrb.mxu2 %v1552_v43  ;;  %968 = vmatpush.bf16.msrb.mxu3 %v1556_v44 }
 0x97e   : >> { %956 = vmatpush.bf16.msrb.mxu2 %v1567_v48  ;;  %969 = vmatpush.bf16.msrb.mxu3 %v1571_v49 }
 0x9f4   : >> { %v588_v1 = vpop.f32.mrf.mxu2  ;;  %v601_v2 = vpop.f32.mrf.mxu3 }
 0x9f5   : >> { %v605_v39 = vadd.f32 %v1492_v21, %v588_v1  ;;  %v628_v40 = vadd.f32 %v1678_v0, %v601_v2 }
 0x9f7   : >> { %1261 = vtanh.f32 %v605_v39  ;;  %v606_v44 = vmul.f32 0.5, %v605_v39  ;;  %v629_v48 = vmul.f32 0.5, %v628_v40 }
 0x9f8   : >> { %1263 = vtanh.f32 %v628_v40 }
 0x9f9   : >> { %1265 = vtanh.f32 %v606_v44 }
 0x9fa   : >> { %1267 = vtanh.f32 %v629_v48 }
 0x9fc   : >> { %v590_v41 = vpop.f32.mrf.mxu2  ;;  %v603_v42 = vpop.f32.mrf.mxu3 }
 0x9fd   : >> { %v1262_v43 = vpop.eup %1261 }
 0x9fe   : >> { %v1264_v3 = vpop.eup %1263  ;;  %613 = vrot.lane.b32.xlu0 %v1262_v43, %s1366_s10 }
 0x9ff   : >> { %639 = vrot.lane.b32.xlu1 %v1264_v3, %s1366_s10  ;;  %v1266_v24 = vpop.eup %1265 }
 0xa00   : >> { %v1268_v49 = vpop.eup %1267  ;;  %v608_v4 = vmul.f32 0.5, %v1266_v24 }
 0xa01   : >> { %v631_v22 = vmul.f32 0.5, %v1268_v49 }
 0xa02   : >> { %v609_v23 = vadd.f32 0.5, %v608_v4 }
 0xa03   : >> { %v632_v26 = vadd.f32 0.5, %v631_v22 }
 0xa04   : >> { %v611_v31 = vmul.f32 %v609_v23, %v527_v37 }
 0xa05   : >> { %v637_v36 = vmul.f32 %v635_v35, %v632_v26 }
 0xa70   : >> { %v614_v27 = vpop.permute.xlu0 %613 }
 0xa71   : >> { %v640_v28 = vpop.permute.xlu1 %639  ;;  %v616_v29 = vmul.f32 %v614_v27, %v609_v23 }
 0xa72   : >> { %v642_v30 = vmul.f32 %v640_v28, %v632_v26 }
 0xa73   : >> { %618 = vrot.lane.b32.xlu2 %v616_v29, %s1367_s11 }
 0xa74   : >> { %644 = vrot.lane.b32.xlu0 %v642_v30, %s1367_s11 }
 0xacd   : >> { %v619_v32 = vpop.permute.xlu2 %618 }
 0xace   : >> { %v621_v25 = vadd.f32 %v619_v32, %v611_v31 }
 0xad0   : >> { %1269 = vtanh.f32 %v621_v25 }
 0xad6   : >> { %v1270_v33 = vpop.eup %1269 }
 0xad7   : >> { %624 = vrot.lane.b32.xlu1 %v1270_v33, %s1366_s10 }
 0xae6   : >> { %v645_v38 = vpop.permute.xlu0 %644 }
 0xae7   : >> { %v647_v45 = vadd.f32 %v645_v38, %v637_v36 }
 0xae9   : >> { %1271 = vtanh.f32 %v647_v45  ;;  %v726_v22 = vrot.slane %v647_v45, 6 }
 0xaef   : >> { %v1272_v50 = vpop.eup %1271 }
 0xaf0   : >> { %650 = vrot.lane.b32.xlu2 %v1272_v50, %s1366_s10 }
 0xb49   : >> { %v625_v51 = vpop.permute.xlu1 %624 }
 0xb4a   : >> { %v651_v54 = vpop.permute.xlu2 %650  ;;  %v627_v55 = vmul.f32 %v625_v51, %v609_v23 }
 0xb4b   : >> { %v653_v56 = vmul.f32 %v651_v54, %v632_v26 }
 0xb4c   : >> { %659 = vrot.lane.b32.xlu1 %v627_v55, %s1366_s10 }
 0xb4d   : >> { %655 = vrot.lane.b32.xlu0 %v653_v56, %s1367_s11 }
 0xbbe   : >> { %v660_v37 = vpop.permute.xlu1 %659 }
 0xbbf   : >> { %v656_v34 = vpop.permute.xlu0 %655 }
 0xbc0   : >> { %v662_v46 = vsel %vm246_vm3, %v656_v34, %v660_v37 }
 0xbc1   : >> { %v663_v53 = vpack.c.bf16 %v662_v46, %v662_v46 }
 0xbc3   : >> { %1134 = vmatmul.msk.bf16.vlgmr.msra.gmra.mxu0 %vm289_vm4, %v663_v53  ;;  %1135 = vmatmul.msk.bf16.vlgmr.msra.gmra.mxu1 %vm289_vm4, %v663_v53 }
 0xc40   : >> { %v676_v57 = vpop.f32.mrf.mxu0  ;;  %v689_v52 = vpop.f32.mrf.mxu1 }
 0xc41   : >> { %v693_v58 = vadd.f32 %v1492_v21, %v676_v57  ;;  %v717_v59 = vrot.slane %v689_v52, 6 }
 0xc43   : >> { %1273 = vtanh.f32 %v693_v58  ;;  %v719_v60 = vadd.f32 %v1678_v0, %v717_v59  ;;  %v694_v1 = vmul.f32 0.5, %v693_v58 }
 0xc45   : >> { %1275 = vtanh.f32 %v719_v60  ;;  %v720_v43 = vmul.f32 0.5, %v719_v60 }
 0xc46   : >> { %1277 = vtanh.f32 %v694_v1 }
 0xc47   : >> { %1279 = vtanh.f32 %v720_v43 }
 0xc48   : >> { %v678_v61 = vpop.f32.mrf.mxu0  ;;  %v691_v62 = vpop.f32.mrf.mxu1 }
 0xc49   : >> { %v1274_v47 = vpop.eup %1273 }
 0xc4a   : >> { %701 = vrot.lane.b32.xlu2 %v1274_v47, %s1366_s10 }
 0xc4b   : >> { %v1276_v63 = vpop.eup %1275 }
 0xc4c   : >> { %730 = vrot.lane.b32.xlu0 %v1276_v63, %s1366_s10  ;;  %v1278_v2 = vpop.eup %1277 }
 0xc4d   : >> { %v696_v39 = vmul.f32 0.5, %v1278_v2  ;;  %v1280_v3 = vpop.eup %1279 }
 0xc4e   : >> { %v722_v44 = vmul.f32 0.5, %v1280_v3 }
 0xc4f   : >> { %v697_v40 = vadd.f32 0.5, %v696_v39 }
 0xc50   : >> { %v723_v48 = vadd.f32 0.5, %v722_v44 }
 0xc51   : >> { %v699_v4 = vmul.f32 %v697_v40, %v621_v25 }
 0xc52   : >> { %v728_v27 = vmul.f32 %v726_v22, %v723_v48 }
 0xca4   : >> { %v702_v41 = vpop.permute.xlu2 %701 }
 0xca5   : >> { %v704_v42 = vmul.f32 %v702_v41, %v697_v40 }
 0xca7   : >> { %706 = vrot.lane.b32.xlu1 %v704_v42, %s1367_s11 }
 0xcbe   : >> { %v731_v24 = vpop.permute.xlu0 %730 }
 0xcbf   : >> { %v733_v49 = vmul.f32 %v731_v24, %v723_v48 }
 0xcc1   : >> { %735 = vrot.lane.b32.xlu2 %v733_v49, %s1367_s11 }
 0xd19   : >> { %v707_v23 = vpop.permute.xlu1 %706 }
 0xd1a   : >> { %v709_v26 = vadd.f32 %v707_v23, %v699_v4 }
 0xd1b   : >> { %v736_v28 = vpop.permute.xlu2 %735 }
 0xd1c   : >> { %1281 = vtanh.f32 %v709_v26  ;;  %v738_v29 = vadd.f32 %v736_v28, %v728_v27 }
 0xd1e   : >> { %1283 = vtanh.f32 %v738_v29  ;;  %v820_v43 = vrot.slane %v738_v29, 6 }
 0xd22   : >> { %v1282_v30 = vpop.eup %1281 }
 0xd23   : >> { %712 = vrot.lane.b32.xlu0 %v1282_v30, %s1366_s10 }
 0xd24   : >> { %v1284_v31 = vpop.eup %1283 }
 0xd25   : >> { %741 = vrot.lane.b32.xlu1 %v1284_v31, %s1366_s10 }
 0xd95   : >> { %v713_v32 = vpop.permute.xlu0 %712 }
 0xd96   : >> { %v715_v33 = vmul.f32 %v713_v32, %v697_v40 }
 0xd97   : >> { %v742_v36 = vpop.permute.xlu1 %741 }
 0xd98   : >> { %v750_v35 = vrot.slane %v715_v33, 6  ;;  %v744_v38 = vmul.f32 %v742_v36, %v723_v48 }
 0xd9a   : >> { %751 = vrot.lane.b32.xlu0 %v750_v35, %s1366_s10  ;;  %746 = vrot.lane.b32.xlu2 %v744_v38, %s1367_s11 }
 0xdf4   : >> { %v747_v25 = vpop.permute.xlu2 %746 }
 0xe0c   : >> { %v752_v45 = vpop.permute.xlu0 %751 }
 0xe0d   : >> { %v754_v50 = vsel %vm246_vm3, %v747_v25, %v752_v45 }
 0xe0e   : >> { %v755_v51 = vpack.c.bf16 %v754_v50, %v754_v50 }
 0xe10   : >> { %v757_v54 = vrot.slane %v755_v51, 1 }
 0xe12   : >> { %1136 = vmatmul.msk.bf16.vlgmr.msra.gmra.mxu2 %vm289_vm4, %v757_v54  ;;  %1137 = vmatmul.msk.bf16.vlgmr.msra.gmra.mxu3 %vm289_vm4, %v757_v54 }
 0xe95   : >> { %v770_v55 = vpop.f32.mrf.mxu2  ;;  %v783_v56 = vpop.f32.mrf.mxu3 }
 0xe96   : >> { %v787_v37 = vadd.f32 %v1492_v21, %v770_v55  ;;  %v811_v34 = vrot.slane %v783_v56, 4 }
 0xe98   : >> { %1285 = vtanh.f32 %v787_v37  ;;  %v813_v46 = vadd.f32 %v1678_v0, %v811_v34  ;;  %v788_v1 = vmul.f32 0.5, %v787_v37 }
 0xe9a   : >> { %1287 = vtanh.f32 %v813_v46  ;;  %v814_v59 = vmul.f32 0.5, %v813_v46 }
 0xe9c   : >> { %1289 = vtanh.f32 %v814_v59 }
 0xe9d   : >> { %v772_v53 = vpop.f32.mrf.mxu2  ;;  %v785_v57 = vpop.f32.mrf.mxu3  ;;  %1291 = vtanh.f32 %v788_v1 }
 0xe9e   : >> { %v1286_v52 = vpop.eup %1285 }
 0xe9f   : >> { %795 = vrot.lane.b32.xlu1 %v1286_v52, %s1366_s10 }
 0xea0   : >> { %v1288_v58 = vpop.eup %1287 }
 0xea1   : >> { %824 = vrot.lane.b32.xlu2 %v1288_v58, %s1366_s10 }
 0xea2   : >> { %v1290_v60 = vpop.eup %1289 }
 0xea3   : >> { %v816_v61 = vmul.f32 0.5, %v1290_v60  ;;  %v1292_v2 = vpop.eup %1291 }
 0xea4   : >> { %v790_v39 = vmul.f32 0.5, %v1292_v2 }
 0xea5   : >> { %v817_v62 = vadd.f32 0.5, %v816_v61 }
 0xea6   : >> { %v791_v40 = vadd.f32 0.5, %v790_v39 }
 0xea7   : >> { %v822_v3 = vmul.f32 %v820_v43, %v817_v62 }
 0xea8   : >> { %v793_v49 = vmul.f32 %v791_v40, %v709_v26 }
 0xefb   : >> { %v825_v47 = vpop.permute.xlu2 %824 }
 0xefc   : >> { %v827_v63 = vmul.f32 %v825_v47, %v817_v62 }
 0xefe   : >> { %829 = vrot.lane.b32.xlu1 %v827_v63, %s1367_s11 }
 0xf11   : >> { %v796_v41 = vpop.permute.xlu1 %795 }
 0xf12   : >> { %v798_v42 = vmul.f32 %v796_v41, %v791_v40 }
 0xf14   : >> { %800 = vrot.lane.b32.xlu0 %v798_v42, %s1367_s11 }
 0xf70   : >> { %v830_v44 = vpop.permute.xlu1 %829 }
 0xf71   : >> { %v832_v48 = vadd.f32 %v830_v44, %v822_v3 }
 0xf73   : >> { %1293 = vtanh.f32 %v832_v48 }
 0xf79   : >> { %v1294_v24 = vpop.eup %1293 }
 0xf7a   : >> { %835 = vrot.lane.b32.xlu0 %v1294_v24, %s1366_s10 }
 0xf86   : >> { %v801_v4 = vpop.permute.xlu0 %800 }
 0xf87   : >> { %v803_v22 = vadd.f32 %v801_v4, %v793_v49 }
 0xf89   : >> { %1295 = vtanh.f32 %v803_v22 }
 0xf8f   : >> { %v1296_v23 = vpop.eup %1295 }
 0xf90   : >> { %806 = vrot.lane.b32.xlu2 %v1296_v23, %s1366_s10 }
 0xfea   : >> { %v807_v27 = vpop.permute.xlu2 %806 }
 0xfeb   : >> { %v809_v28 = vmul.f32 %v807_v27, %v791_v40  ;;  %v914_v40 = vrot.slane %v832_v48, 6 }
 0xfec   : >> { %v836_v31 = vpop.permute.xlu0 %835 }
 0xfed   : >> { %v844_v30 = vrot.slane %v809_v28, 4  ;;  %v838_v32 = vmul.f32 %v836_v31, %v817_v62 }
 0xfef   : >> { %845 = vrot.lane.b32.xlu2 %v844_v30, %s1366_s10  ;;  %840 = vrot.lane.b32.xlu1 %v838_v32, %s1367_s11 }
0x1049   : >> { %v846_v29 = vpop.permute.xlu2 %845 }
0x1061   : >> { %v841_v33 = vpop.permute.xlu1 %840 }
0x1062   : >> { %v848_v35 = vsel %vm246_vm3, %v841_v33, %v846_v29 }
0x1063   : >> { %v849_v26 = vpack.c.bf16 %v848_v35, %v848_v35 }
0x1065   : >> { %v851_v36 = vrot.slane %v849_v26, 2 }
0x1067   : >> { %1138 = vmatmul.msk.bf16.vlgmr.msrb.gmra.mxu0 %vm289_vm4, %v851_v36  ;;  %1139 = vmatmul.msk.bf16.vlgmr.msrb.gmra.mxu1 %vm289_vm4, %v851_v36 }
0x10e4   : >> { %v864_v38 = vpop.f32.mrf.mxu0  ;;  %v877_v25 = vpop.f32.mrf.mxu1 }
0x10e5   : >> { %v881_v45 = vadd.f32 %v1492_v21, %v864_v38  ;;  %v905_v50 = vrot.slane %v877_v25, 2 }
0x10e7   : >> { %1297 = vtanh.f32 %v881_v45  ;;  %v907_v51 = vadd.f32 %v1678_v0, %v905_v50  ;;  %v882_v34 = vmul.f32 0.5, %v881_v45 }
0x10e9   : >> { %1299 = vtanh.f32 %v907_v51  ;;  %v908_v46 = vmul.f32 0.5, %v907_v51 }
0x10ea   : >> { %1301 = vtanh.f32 %v882_v34 }
0x10eb   : >> { %1303 = vtanh.f32 %v908_v46 }
0x10ec   : >> { %v866_v54 = vpop.f32.mrf.mxu0  ;;  %v879_v55 = vpop.f32.mrf.mxu1 }
0x10ed   : >> { %v1298_v56 = vpop.eup %1297 }
0x10ee   : >> { %889 = vrot.lane.b32.xlu0 %v1298_v56, %s1366_s10 }
0x10ef   : >> { %v1300_v37 = vpop.eup %1299 }
0x10f0   : >> { %918 = vrot.lane.b32.xlu1 %v1300_v37, %s1366_s10  ;;  %v1302_v53 = vpop.eup %1301 }
0x10f1   : >> { %v1304_v57 = vpop.eup %1303  ;;  %v884_v52 = vmul.f32 0.5, %v1302_v53 }
0x10f2   : >> { %v910_v58 = vmul.f32 0.5, %v1304_v57 }
0x10f3   : >> { %v885_v59 = vadd.f32 0.5, %v884_v52 }
0x10f4   : >> { %v911_v61 = vadd.f32 0.5, %v910_v58 }
0x10f5   : >> { %v887_v63 = vmul.f32 %v885_v59, %v803_v22 }
0x10f6   : >> { %v916_v41 = vmul.f32 %v914_v40, %v911_v61 }
0x1160   : >> { %v890_v60 = vpop.permute.xlu0 %889 }
0x1161   : >> { %v892_v0 = vmul.f32 %v890_v60, %v885_v59 }
0x1162   : >> { %v919_v62 = vpop.permute.xlu1 %918 }
0x1163   : >> { %894 = vrot.lane.b32.xlu2 %v892_v0, %s1367_s11  ;;  %v921_v47 = vmul.f32 %v919_v62, %v911_v61 }
0x1165   : >> { %923 = vrot.lane.b32.xlu0 %v921_v47, %s1367_s11 }
0x11bd   : >> { %v895_v1 = vpop.permute.xlu2 %894 }
0x11be   : >> { %v897_v2 = vadd.f32 %v895_v1, %v887_v63 }
0x11c0   : >> { %1305 = vtanh.f32 %v897_v2 }
0x11c6   : >> { %v1306_v39 = vpop.eup %1305 }
0x11c7   : >> { %900 = vrot.lane.b32.xlu1 %v1306_v39, %s1366_s10 }
0x11d7   : >> { %v924_v42 = vpop.permute.xlu0 %923 }
0x11d8   : >> { %v926_v43 = vadd.f32 %v924_v42, %v916_v41 }
0x11da   : >> { %1307 = vtanh.f32 %v926_v43  ;;  %v999_v36 = vrot.slane %v926_v43, 6 }
0x11e0   : >> { %v1308_v3 = vpop.eup %1307 }
0x11e1   : >> { %929 = vrot.lane.b32.xlu2 %v1308_v3, %s1366_s10 }
0x1239   : >> { %v901_v44 = vpop.permute.xlu1 %900 }
0x123a   : >> { %v903_v24 = vmul.f32 %v901_v44, %v885_v59 }
0x123b   : >> { %v930_v4 = vpop.permute.xlu2 %929 }
0x123c   : >> { %v938_v49 = vrot.slane %v903_v24, 2  ;;  %v932_v23 = vmul.f32 %v930_v4, %v911_v61 }
0x123e   : >> { %939 = vrot.lane.b32.xlu1 %v938_v49, %s1366_s10  ;;  %934 = vrot.lane.b32.xlu0 %v932_v23, %s1367_s11 }
0x12b0   : >> { %v940_v22 = vpop.permute.xlu1 %939  ;;  %v935_v27 = vpop.permute.xlu0 %934 }
0x12b1   : >> { %v942_v48 = vsel %vm246_vm3, %v935_v27, %v940_v22 }
0x12b2   : >> { %v943_v28 = vpack.c.bf16 %v942_v48, %v942_v48 }
0x12b4   : >> { %v945_v30 = vrot.slane %v943_v28, 3 }
0x12b6   : >> { %1140 = vmatmul.msk.bf16.vlgmr.msrb.gmra.mxu2 %vm289_vm4, %v945_v30  ;;  %1141 = vmatmul.msk.bf16.vlgmr.msrb.gmra.mxu3 %vm289_vm4, %v945_v30 }
0x1339   : >> { %v958_v31 = vpop.f32.mrf.mxu2  ;;  %v971_v32 = vpop.f32.mrf.mxu3  }
0x133a   : >> { %v975_v29 = vadd.f32 %v1492_v21, %v958_v31  ;;  %v1766_v1 = vmov %v971_v32 }
0x133c   : >> { %1309 = vtanh.f32 %v975_v29  ;;  %v976_v38 = vmul.f32 0.5, %v975_v29 }
0x133e   : >> { %1311 = vtanh.f32 %v976_v38 }
0x1341   : >> { %v960_v33 = vpop.f32.mrf.mxu2  ;;  %v973_v35 = vpop.f32.mrf.mxu3 }
0x1342   : >> { %v1310_v26 = vpop.eup %1309 }
0x1343   : >> { %983 = vrot.lane.b32.xlu2 %v1310_v26, %s1366_s10 }
0x1344   : >> { %v1312_v25 = vpop.eup %1311 }
0x1345   : >> { %v978_v45 = vmul.f32 0.5, %v1312_v25 }
0x1347   : >> { %v979_v50 = vadd.f32 0.5, %v978_v45 }
0x1349   : >> { %v981_v56 = vmul.f32 %v979_v50, %v897_v2 }
0x134b   : >> { %1000 = vrot.lane.b32.xlu2 %v999_v36, %s1368_s14 }
0x139d   : >> { %v984_v51 = vpop.permute.xlu2 %983 }
0x139e   : >> { %v986_v54 = vmul.f32 %v984_v51, %v979_v50 }
0x13a0   : >> { %988 = vrot.lane.b32.xlu0 %v986_v54, %s1367_s11 }
0x13a5   : >> { %v1001_v55 = vpop.permute.xlu2 %1000  }
0x13a6   : >> { %v1765_v2 = vmov %v1001_v55 }
0x1412   : >> { %v989_v37 = vpop.permute.xlu0 %988 }
0x1413   : >> { %v991_v34 = vadd.f32 %v989_v37, %v981_v56 }
0x1415   : >> { %1313 = vtanh.f32 %v991_v34 }
0x141b   : >> { %v1314_v46 = vpop.eup %1313 }
0x141c   : >> { %994 = vrot.lane.b32.xlu1 %v1314_v46, %s1366_s10 }
0x1424   : >> { %1008 = vrot.lane.b32.xlu1 %v991_v34, %s1368_s14 }
0x148e   : >> { %v995_v53 = vpop.permute.xlu1 %994 }
0x148f   : >> { %v997_v57 = vmul.f32 %v995_v53, %v979_v50 }
0x1491   : >> { %1004 = vrot.lane.b32.xlu0 %v997_v57, %s1367_s11 }
0x1496   : >> { %v1009_v52 = vpop.permute.xlu1 %1008  }
0x1497   : >> { %v1763_v23 = vmov %v1009_v52 }
0x1500   : > { %196 = sbr.rel (!%p194_p5) target bundleno = 166 (0xa6), region = 74 }
0x1503   : >> { %v1005_v58 = vpop.permute.xlu0 %1004  }
0x1504   : >> { %v1764_v22 = vmov %v1005_v58  ;;  %1012 = vrot.lane.b32.xlu0 (%p194_p5), %v1005_v58, %s1369_s15 }
0x150c   : > { %1016 = vrot.lane.b32.xlu0 %v1009_v52, %s1365_s20 }
0x1576   : > { %v1013_v59 = vpop.permute.xlu0 %1012 }
0x1577   : > { %v1020_v60 = vsel %vm246_vm3, %v1001_v55, %v1013_v59 }
0x157e   : > { %v1017_v0 = vpop.permute.xlu0 %1016 }
0x157f   : > { %v1022_v61 = vsel %vm289_vm4, %v1020_v60, %v1017_v0  ;;  %1035 = sbr.rel (%p1142_p6) target bundleno = 5510 (0x1586), region = 47 }
0x1580   : > { %v1025_v62 = vrot.slane %v1022_v61, 6 }
0x1582   : > { %v1027_v47 = vsel %vm1026_vm5, %v971_v32, %v1025_v62 }
0x1583   : > { %1031 = vst.msk [vmem:[#allocation2] sm:$0xf] %vm1030_vm7, %v1027_v47 }
0x1584   : > { %vm1036_vm8 = vcmask 254976  }
0x1585   : > { %1037 = vst.msk [vmem:[%s1762_s3] sm:$0x3] %vm1036_vm8, %v1005_v58 }
0x1586 PF: > { %s13_s12 = sadd.s32 1, %s1341_s12  }
0x1587   : > { %p10_p7 = scmp.ge.s32.totalorder %s13_s12, 4  }
0x1589   :  { %12 = sbr.rel (!%p10_p7) target bundleno = 1 (0x1), region = 85 }

</bundles_post_ra>
